<compile_context>
chip_gen: v6e
topology: v6e:2x2x1
jax: 0.10.0
libtpu: 0.0.40
codegen_flags: <defaults>
</compile_context>

<pallas_src>
import jax
import jax.numpy as jnp
from jax.experimental import pallas as pl
from jax.experimental.pallas import tpu as pltpu

# ----------------------- static config (synthetic stand-ins) -----------------------
B = 2
H = W = 16                  # input L/ab resolution; x is [B, 3, 16, 16] (NCHW)
IMG_DIMS = (6, 6)           # c.img_dims : ab resolution fed into the INN
C_FEAT = 8                  # feature-network output channels
FC_DIM = 16                 # fc_cond_network output width
CLAMP = 1.9                 # soft clamp on coupling log-scales (GLOW-style)
SCALES = (2.0, 1.0, 1.0)    # data.scales   (deterministic synthetic values)
OFFSETS = (10.0, 0.0, 0.0)  # data.offsets  (deterministic synthetic values)
NOISE_STD = 0.05

S = IMG_DIMS[0] * IMG_DIMS[1]   # 36 cropped spatial positions (the 6x6 inner block)
BS = B * S                       # 72 per-pixel rows (the kernel's main "M" dimension)
D = 2 * S                        # 72 flattened ab dims per sample
ST4 = 4 * S                      # 144 = per-pixel (s_c0, s_c1, t_c0, t_c1) columns
OUT_LANES = 128                  # merged lane-dense output slab width
JAC_LANE = 64                    # jac lives at lanes [64, 128), zz at [0, 64)


# --------------------------------- fused Pallas kernel ----------------------------------
def _wrapped_model_kernel(patches_ref, xab_ref, seg_ref, rep_ref, sel4_ref,
                          w_feat_ref, b_feat_ref, w_fc_ref, b_fc_ref,
                          w_cc_ref, b_cc_ref, w_fcc_ref, b_fcc_ref,
                          out_ref):
    f32 = jnp.float32
    bf16 = jnp.bfloat16

    # (1) feature network: 3x3 stride-2 conv + ReLU at the 6x6 cropped positions,
    #     as a dense per-pixel matmul  [B*S, 9] @ [9, C_FEAT]   (review item 1)
    feat = jnp.dot(patches_ref[...].astype(bf16), w_feat_ref[...],
                   preferred_element_type=f32) + b_feat_ref[...]
    feat = jnp.maximum(feat, 0.0)                                        # [BS, C_FEAT] f32

    # (2) fc_cond_network: per-batch mean pool (tiny segment matmul) + Linear
    #     (replaces the tiled [S*C_FEAT, FC_DIM] weight; review item 3)
    pooled = jnp.dot(seg_ref[...], feat, preferred_element_type=f32) * (1.0 / S)  # [B, C_FEAT]
    cond = jnp.dot(pooled.astype(bf16), w_fc_ref[...],
                   preferred_element_type=f32) + b_fc_ref[...]            # [B, FC_DIM]

    # (3) conv-conditioned coupling: per-pixel 1x1 conv -> (s_c0, s_c1, t_c0, t_c1)
    #     as a dense [B*S, C_FEAT] @ [C_FEAT, 4] matmul            (review item 2)
    st1 = jnp.dot(feat.astype(bf16), w_cc_ref[...],
                  preferred_element_type=f32) + b_cc_ref[...]             # [BS, 4]

    # (4) fc-conditioned coupling pre-activations.  Columns of w_fcc are pre-permuted to
    #     pixel-major (p*4 + {s0,s1,t0,t1}); the per-sample row is replicated to per-pixel
    #     rows with a tiny matmul and each row then picks its own pixel's 4 columns with an
    #     iota mask (lane reduce) - no sublane<->lane relayout anywhere.
    st2_b = jnp.dot(cond.astype(bf16), w_fcc_ref[...],
                    preferred_element_type=f32) + b_fcc_ref[...]          # [B, 4*S]
    st2_rep = jnp.dot(rep_ref[...], st2_b, preferred_element_type=f32)    # [BS, 4*S]

    lane = jax.lax.broadcasted_iota(jnp.int32, (BS, ST4), 1)
    sel4 = sel4_ref[...]                                                  # [BS, 1] = pixel*4
    xab = xab_ref[...]                                                    # [BS, 2] f32

    zz_rows = jnp.zeros((BS, 1), f32)
    jac_rows = jnp.zeros((BS, 1), f32)
    for c in range(2):                                   # the 2 ab channels (static unroll)
        s1_c = CLAMP * jnp.tanh(st1[:, c:c + 1])
        t1_c = st1[:, 2 + c:3 + c]
        z1_c = xab[:, c:c + 1] * jnp.exp(s1_c) + t1_c
        s2_c = CLAMP * jnp.tanh(
            jnp.sum(jnp.where(lane == sel4 + c, st2_rep, 0.0),
                    axis=1, keepdims=True))
        t2_c = jnp.sum(jnp.where(lane == sel4 + (2 + c), st2_rep, 0.0),
                       axis=1, keepdims=True)
        z2_c = z1_c * jnp.exp(s2_c) + t2_c
        zz_rows = zz_rows + z2_c * z2_c                  # zz = sum(z**2, dim=1)
        jac_rows = jac_rows + s1_c + s2_c                # jac = sum of coupling log-scales

    # per-batch reductions via the 0/1 segment matrix (rows of a batch -> one scalar)
    zz_b = jnp.dot(seg_ref[...], zz_rows, preferred_element_type=f32)     # [B, 1]
    jac_b = jnp.dot(seg_ref[...], jac_rows, preferred_element_type=f32)   # [B, 1]

    # one merged lane-dense output slab: zz broadcast over lanes [0,64), jac over [64,128)
    out_lane = jax.lax.broadcasted_iota(jnp.int32, (B, OUT_LANES), 1)
    out_ref[...] = jnp.where(out_lane < JAC_LANE,
                             jnp.broadcast_to(zz_b, (B, OUT_LANES)),
                             jnp.broadcast_to(jac_b, (B, OUT_LANES)))


def _fused_pallas_call(patches, xab_pp, prep):
    vmem = lambda: pl.BlockSpec(memory_space=pltpu.MemorySpace.VMEM)
    return pl.pallas_call(
        _wrapped_model_kernel,
        out_shape=jax.ShapeDtypeStruct((B, OUT_LANES), jnp.float32),
        in_specs=[vmem() for _ in range(13)],
        out_specs=vmem(),
        cost_estimate=pl.CostEstimate(flops=180_000, transcendentals=600,
                                      bytes_accessed=16_000),
    )(patches, xab_pp,
      prep["seg"], prep["rep"], prep["sel4"],
      prep["w_feat"], prep["b_feat"],
      prep["w_fc"], prep["b_fc"],
      prep["w_cc"], prep["b_cc"],
      prep["w_fcc_pm"], prep["b_fcc_pm"])


# ------------------------------ parameters (synthetic) ------------------------------
def init_params(key):
    ks = jax.random.split(key, 8)
    return {
        # Conv2d(1, C_FEAT, 3, stride=2, pad=1) as im2col weight [Cin*kh*kw=9, C_FEAT];
        # row k = kh*3 + kw  ==  flatten of the torch weight [Cout, 1, kh, kw].
        "w_feat": 0.1 * jax.random.normal(ks[0], (9, C_FEAT), jnp.float32),
        "b_feat": 0.1 * jax.random.normal(ks[1], (1, C_FEAT), jnp.float32),
        # fc_cond_network: Linear(C_FEAT, FC_DIM) on mean-pooled features
        "w_fc": 0.1 * jax.random.normal(ks[2], (C_FEAT, FC_DIM), jnp.float32),
        "b_fc": 0.1 * jax.random.normal(ks[3], (1, FC_DIM), jnp.float32),
        # INN block 1: 1x1 conv features -> (s_c0, s_c1, t_c0, t_c1)
        "w_cc": 0.1 * jax.random.normal(ks[4], (C_FEAT, 4), jnp.float32),
        "b_cc": 0.1 * jax.random.normal(ks[5], (1, 4), jnp.float32),
        # INN block 2: Linear(FC_DIM, 2*D); column c*S+p = s, column D+c*S+p = t
        "w_fcc": 0.1 * jax.random.normal(ks[6], (FC_DIM, 2 * D), jnp.float32),
        "b_fcc": 0.1 * jax.random.normal(ks[7], (1, 2 * D), jnp.float32),
    }


def prepare_params(p):
    """One-time weight prep: bf16 cast of the learned matmul weights (review item 4),
    pixel-major column permutation of the fc-coupling weight, and the tiny structural
    constants (segment / replication matrices, pixel-index column)."""
    bf = jnp.bfloat16
    # pixel-major permutation of w_fcc columns: out column p*4+k with
    # k=0 -> s ch0 (orig col p), k=1 -> s ch1 (S+p), k=2 -> t ch0 (D+p), k=3 -> t ch1 (D+S+p)
    p_ar = jnp.arange(S)
    perm = jnp.stack([p_ar, S + p_ar, D + p_ar, D + S + p_ar], axis=1).reshape(-1)
    w_fcc_pm = p["w_fcc"][:, perm]
    b_fcc_pm = p["b_fcc"][:, perm]

    seg = jnp.kron(jnp.eye(B, dtype=jnp.float32),
                   jnp.ones((1, S), jnp.float32))                  # [B, B*S] 0/1 segments
    rep = seg.T                                                     # [B*S, B] replication
    sel4 = ((jnp.arange(BS) % S) * 4).astype(jnp.int32).reshape(BS, 1)

    return {
        "w_feat": p["w_feat"].astype(bf), "b_feat": p["b_feat"],
        "w_fc": p["w_fc"].astype(bf), "b_fc": p["b_fc"],
        "w_cc": p["w_cc"].astype(bf), "b_cc": p["b_cc"],
        "w_fcc_pm": w_fcc_pm.astype(bf), "b_fcc_pm": b_fcc_pm,
        "seg": seg, "rep": rep, "sel4": sel4,
    }


# --------------------------------- forward wrapper ----------------------------------
@jax.jit
def wrapped_model_forward(x, prep, noise_key):
    """x: [B, 3, H, W] float32 (NCHW, like the PyTorch module). Returns (zz[B], jac[B])."""
    x = x.astype(jnp.float32)
    x_l, x_ab = x[:, 0], x[:, 1:]                                    # [B,H,W], [B,2,H,W]

    # F.interpolate(x_ab, size=c.img_dims)   (PyTorch default mode='nearest')
    hi = (jnp.arange(IMG_DIMS[0]) * H) // IMG_DIMS[0]
    wi = (jnp.arange(IMG_DIMS[1]) * W) // IMG_DIMS[1]
    x_ab = x_ab[:, :, hi][:, :, :, wi]                               # [B, 2, 6, 6]
    # x_ab += 0.05 * FloatTensor(shape).normal_()
    # TODO(synk): noise kept as one fused XLA op (exact Gaussian semantics); could move
    # in-kernel via pltpu.prng_seed/stateful_normal to fold the whole prologue.
    x_ab = x_ab + NOISE_STD * jax.random.normal(noise_key, x_ab.shape, jnp.float32)
    xab_pp = x_ab.transpose(0, 2, 3, 1).reshape(BS, 2)               # per-pixel rows, ch lanes

    # features = feature_network.features(x_l * scales[0] + offsets[0] - 50);
    # only the 6x6 inner positions are computed since the wrapper crops [1:-1,1:-1] anyway.
    xl_s = x_l * SCALES[0] + OFFSETS[0] - 50.0
    xp = jnp.pad(xl_s, ((0, 0), (1, 1), (1, 1)))                     # pad=1 -> [B, 18, 18]
    # im2col for the cropped 6x6 outputs of the 3x3 stride-2 conv (output (oi,oj), oi,oj=1..6)
    cols = [xp[:, 2 + di:13 + di:2, 2 + dj:13 + dj:2]
            for di in range(3) for dj in range(3)]                   # 9 x [B, 6, 6]
    patches = jnp.stack(cols, axis=-1).reshape(BS, 9)                # [72, 9], row = b*S+p

    slab = _fused_pallas_call(patches, xab_pp, prep)                 # [B, 128]
    return slab[:, 0], slab[:, JAC_LANE]


# ----------------------- straightforward XLA reference (validation) -----------------------
def reference_forward(x, p, noise_key):
    """Channel-major / conv-based reference in the module's original structure, mirroring the
    kernel's bf16-weight / f32-accumulate precision (validates the per-pixel re-layout)."""
    bf = jnp.bfloat16
    x = x.astype(jnp.float32)
    x_l, x_ab = x[:, 0:1], x[:, 1:]
    hi = (jnp.arange(IMG_DIMS[0]) * H) // IMG_DIMS[0]
    wi = (jnp.arange(IMG_DIMS[1]) * W) // IMG_DIMS[1]
    x_ab = x_ab[:, :, hi][:, :, :, wi]
    x_ab = x_ab + NOISE_STD * jax.random.normal(noise_key, x_ab.shape, jnp.float32)

    xl_s = x_l * SCALES[0] + OFFSETS[0] - 50.0
    w_oihw = p["w_feat"].astype(bf).T.reshape(C_FEAT, 1, 3, 3)
    feat = jax.lax.conv_general_dilated(
        xl_s.astype(bf), w_oihw, window_strides=(2, 2), padding=((1, 1), (1, 1)),
        dimension_numbers=("NCHW", "OIHW", "NCHW"),
        preferred_element_type=jnp.float32)
    feat = jnp.maximum(feat + p["b_feat"].reshape(1, C_FEAT, 1, 1), 0.0)
    feat = feat[:, :, 1:-1, 1:-1]                                    # crop -> [B, C, 6, 6]
    feat_pp = feat.transpose(0, 2, 3, 1).reshape(B, S, C_FEAT)

    pooled = jnp.mean(feat_pp, axis=1)                               # [B, C_FEAT]
    cond = jnp.dot(pooled.astype(bf), p["w_fc"].astype(bf),
                   preferred_element_type=jnp.float32) + p["b_fc"]

    st1 = jnp.einsum("bsf,fk->bsk", feat_pp.astype(bf), p["w_cc"].astype(bf),
                     preferred_element_type=jnp.float32) + p["b_cc"]  # [B, S, 4]
    s1 = CLAMP * jnp.tanh(st1[..., 0:2])
    t1 = st1[..., 2:4]
    xab_pp = x_ab.transpose(0, 2, 3, 1).reshape(B, S, 2)
    z1_pp = xab_pp * jnp.exp(s1) + t1
    z1_cm = z1_pp.transpose(0, 2, 1).reshape(B, D)                   # NCHW (channel-major) flatten

    st2 = jnp.dot(cond.astype(bf), p["w_fcc"].astype(bf),
                  preferred_element_type=jnp.float32) + p["b_fcc"]    # [B, 2D]
    s2 = CLAMP * jnp.tanh(st2[:, :D])
    t2 = st2[:, D:]
    z2 = z1_cm * jnp.exp(s2) + t2
    zz = jnp.sum(z2 * z2, axis=1)
    jac = jnp.sum(s1, axis=(1, 2)) + jnp.sum(s2, axis=1)
    return zz, jac


# --------------------------------------- main ---------------------------------------
if __name__ == "__main__":
    key = jax.random.PRNGKey(0)
    k_param, k_input, k_noise = jax.random.split(key, 3)
    raw_params = init_params(k_param)
    prep = prepare_params(raw_params)        # one-time weight prep (bf16 + permutations)
    x = jax.random.normal(k_input, (B, 3, H, W), jnp.float32)        # NCHW, like PyTorch

    zz, jac = wrapped_model_forward(x, prep, k_noise)
    jax.block_until_ready((zz, jac))

    assert zz.shape == (B,) and jac.shape == (B,)
    assert bool(jnp.all(jnp.isfinite(zz))) and bool(jnp.all(jnp.isfinite(jac)))

    # layout / fusion correctness check (loose tolerance: both paths use bf16 MXU inputs,
    # so only accumulation-order / rounding differences remain; layout bugs would be O(1)+)
    zz_ref, jac_ref = reference_forward(x, raw_params, k_noise)
    assert bool(jnp.allclose(zz, zz_ref, rtol=8e-2, atol=1.0)), (zz, zz_ref)
    assert bool(jnp.allclose(jac, jac_ref, rtol=8e-2, atol=1.0)), (jac, jac_ref)

    print("KERNEL_OK")
</pallas_src>

<mosaic_0001>
module attributes {stable_mosaic.version = 11 : i64} {
  func.func @_wrapped_model_kernel(%arg0: memref<72x9xf32, #tpu.memory_space<vmem>>, %arg1: memref<72x2xf32, #tpu.memory_space<vmem>>, %arg2: memref<2x72xf32, #tpu.memory_space<vmem>>, %arg3: memref<72x2xf32, #tpu.memory_space<vmem>>, %arg4: memref<72x1xi32, #tpu.memory_space<vmem>>, %arg5: memref<9x8xbf16, #tpu.memory_space<vmem>>, %arg6: memref<1x8xf32, #tpu.memory_space<vmem>>, %arg7: memref<8x16xbf16, #tpu.memory_space<vmem>>, %arg8: memref<1x16xf32, #tpu.memory_space<vmem>>, %arg9: memref<8x4xbf16, #tpu.memory_space<vmem>>, %arg10: memref<1x4xf32, #tpu.memory_space<vmem>>, %arg11: memref<16x144xbf16, #tpu.memory_space<vmem>>, %arg12: memref<1x144xf32, #tpu.memory_space<vmem>>, %arg13: memref<2x128xf32, #tpu.memory_space<vmem>>) attributes {dimension_semantics = [], scalar_prefetch = 0 : i64, scratch_operands = 0 : i64, tpu.core_type = #tpu.core_type<tc>} {
    %c0 = arith.constant 0 : index
    %c0_0 = arith.constant 0 : index
    %0 = vector.load %arg0[%c0, %c0_0] : memref<72x9xf32, #tpu.memory_space<vmem>>, vector<72x9xf32>
    %1 = arith.truncf %0 : vector<72x9xf32> to vector<72x9xbf16>
    %c0_1 = arith.constant 0 : index
    %c0_2 = arith.constant 0 : index
    %2 = vector.load %arg5[%c0_1, %c0_2] : memref<9x8xbf16, #tpu.memory_space<vmem>>, vector<9x8xbf16>
    %cst = arith.constant dense<0.000000e+00> : vector<72x8xf32>
    %3 = tpu.matmul %1, %2, %cst {dimension_numbers = #tpu.dot_dimension_numbers<[1], [0], [0], [1], [0, 0, 1, 1], [], []>} : vector<72x9xbf16>, vector<9x8xbf16>, vector<72x8xf32> -> vector<72x8xf32>
    %c0_3 = arith.constant 0 : index
    %c0_4 = arith.constant 0 : index
    %4 = vector.load %arg6[%c0_3, %c0_4] : memref<1x8xf32, #tpu.memory_space<vmem>>, vector<1x8xf32>
    %5 = vector.broadcast %4 : vector<1x8xf32> to vector<72x8xf32>
    %6 = arith.addf %3, %5 : vector<72x8xf32>
    %cst_5 = arith.constant 0.000000e+00 : f32
    %7 = vector.broadcast %cst_5 : f32 to vector<72x8xf32>
    %8 = arith.maximumf %6, %7 : vector<72x8xf32>
    %c0_6 = arith.constant 0 : index
    %c0_7 = arith.constant 0 : index
    %9 = vector.load %arg2[%c0_6, %c0_7] : memref<2x72xf32, #tpu.memory_space<vmem>>, vector<2x72xf32>
    %cst_8 = arith.constant dense<0.000000e+00> : vector<2x8xf32>
    %10 = tpu.matmul %9, %8, %cst_8 {dimension_numbers = #tpu.dot_dimension_numbers<[1], [0], [0], [1], [0, 0, 1, 1], [], []>} : vector<2x72xf32>, vector<72x8xf32>, vector<2x8xf32> -> vector<2x8xf32>
    %cst_9 = arith.constant 0.027777778 : f32
    %11 = vector.broadcast %cst_9 : f32 to vector<2x8xf32>
    %12 = arith.mulf %10, %11 : vector<2x8xf32>
    %13 = arith.truncf %12 : vector<2x8xf32> to vector<2x8xbf16>
    %c0_10 = arith.constant 0 : index
    %c0_11 = arith.constant 0 : index
    %14 = vector.load %arg7[%c0_10, %c0_11] : memref<8x16xbf16, #tpu.memory_space<vmem>>, vector<8x16xbf16>
    %cst_12 = arith.constant dense<0.000000e+00> : vector<2x16xf32>
    %15 = tpu.matmul %13, %14, %cst_12 {dimension_numbers = #tpu.dot_dimension_numbers<[1], [0], [0], [1], [0, 0, 1, 1], [], []>} : vector<2x8xbf16>, vector<8x16xbf16>, vector<2x16xf32> -> vector<2x16xf32>
    %c0_13 = arith.constant 0 : index
    %c0_14 = arith.constant 0 : index
    %16 = vector.load %arg8[%c0_13, %c0_14] : memref<1x16xf32, #tpu.memory_space<vmem>>, vector<1x16xf32>
    %17 = vector.broadcast %16 : vector<1x16xf32> to vector<2x16xf32>
    %18 = arith.addf %15, %17 : vector<2x16xf32>
    %19 = arith.truncf %8 : vector<72x8xf32> to vector<72x8xbf16>
    %c0_15 = arith.constant 0 : index
    %c0_16 = arith.constant 0 : index
    %20 = vector.load %arg9[%c0_15, %c0_16] : memref<8x4xbf16, #tpu.memory_space<vmem>>, vector<8x4xbf16>
    %cst_17 = arith.constant dense<0.000000e+00> : vector<72x4xf32>
    %21 = tpu.matmul %19, %20, %cst_17 {dimension_numbers = #tpu.dot_dimension_numbers<[1], [0], [0], [1], [0, 0, 1, 1], [], []>} : vector<72x8xbf16>, vector<8x4xbf16>, vector<72x4xf32> -> vector<72x4xf32>
    %c0_18 = arith.constant 0 : index
    %c0_19 = arith.constant 0 : index
    %22 = vector.load %arg10[%c0_18, %c0_19] : memref<1x4xf32, #tpu.memory_space<vmem>>, vector<1x4xf32>
    %23 = vector.broadcast %22 : vector<1x4xf32> to vector<72x4xf32>
    %24 = arith.addf %21, %23 : vector<72x4xf32>
    %25 = arith.truncf %18 : vector<2x16xf32> to vector<2x16xbf16>
    %c0_20 = arith.constant 0 : index
    %c0_21 = arith.constant 0 : index
    %26 = vector.load %arg11[%c0_20, %c0_21] : memref<16x144xbf16, #tpu.memory_space<vmem>>, vector<16x144xbf16>
    %cst_22 = arith.constant dense<0.000000e+00> : vector<2x144xf32>
    %27 = tpu.matmul %25, %26, %cst_22 {dimension_numbers = #tpu.dot_dimension_numbers<[1], [0], [0], [1], [0, 0, 1, 1], [], []>} : vector<2x16xbf16>, vector<16x144xbf16>, vector<2x144xf32> -> vector<2x144xf32>
    %c0_23 = arith.constant 0 : index
    %c0_24 = arith.constant 0 : index
    %28 = vector.load %arg12[%c0_23, %c0_24] : memref<1x144xf32, #tpu.memory_space<vmem>>, vector<1x144xf32>
    %29 = vector.broadcast %28 : vector<1x144xf32> to vector<2x144xf32>
    %30 = arith.addf %27, %29 : vector<2x144xf32>
    %c0_25 = arith.constant 0 : index
    %c0_26 = arith.constant 0 : index
    %31 = vector.load %arg3[%c0_25, %c0_26] : memref<72x2xf32, #tpu.memory_space<vmem>>, vector<72x2xf32>
    %cst_27 = arith.constant dense<0.000000e+00> : vector<72x144xf32>
    %32 = tpu.matmul %31, %30, %cst_27 {dimension_numbers = #tpu.dot_dimension_numbers<[1], [0], [0], [1], [0, 0, 1, 1], [], []>} : vector<72x2xf32>, vector<2x144xf32>, vector<72x144xf32> -> vector<72x144xf32>
    %33 = tpu.iota {dimensions = array<i32: 1>} : vector<72x144xi32>
    %c0_28 = arith.constant 0 : index
    %c0_29 = arith.constant 0 : index
    %34 = vector.load %arg4[%c0_28, %c0_29] : memref<72x1xi32, #tpu.memory_space<vmem>>, vector<72x1xi32>
    %c0_30 = arith.constant 0 : index
    %c0_31 = arith.constant 0 : index
    %35 = vector.load %arg1[%c0_30, %c0_31] : memref<72x2xf32, #tpu.memory_space<vmem>>, vector<72x2xf32>
    %cst_32 = arith.constant 0.000000e+00 : f32
    %36 = vector.broadcast %cst_32 : f32 to vector<72x1xf32>
    %cst_33 = arith.constant 0.000000e+00 : f32
    %37 = vector.broadcast %cst_33 : f32 to vector<72x1xf32>
    %38 = vector.extract_strided_slice %24 {offsets = [0, 0], sizes = [72, 1], strides = [1, 1]} : vector<72x4xf32> to vector<72x1xf32>
    %39 = math.tanh %38 : vector<72x1xf32>
    %cst_34 = arith.constant 1.900000e+00 : f32
    %40 = vector.broadcast %cst_34 : f32 to vector<72x1xf32>
    %41 = arith.mulf %40, %39 : vector<72x1xf32>
    %42 = vector.extract_strided_slice %24 {offsets = [0, 2], sizes = [72, 1], strides = [1, 1]} : vector<72x4xf32> to vector<72x1xf32>
    %43 = vector.extract_strided_slice %35 {offsets = [0, 0], sizes = [72, 1], strides = [1, 1]} : vector<72x2xf32> to vector<72x1xf32>
    %44 = math.exp %41 : vector<72x1xf32>
    %45 = arith.mulf %43, %44 : vector<72x1xf32>
    %46 = arith.addf %45, %42 : vector<72x1xf32>
    %c0_i32 = arith.constant 0 : i32
    %47 = vector.broadcast %c0_i32 : i32 to vector<72x1xi32>
    %48 = arith.addi %34, %47 : vector<72x1xi32>
    %49 = vector.broadcast %48 : vector<72x1xi32> to vector<72x144xi32>
    %50 = arith.cmpi eq, %33, %49 : vector<72x144xi32>
    %cst_35 = arith.constant 0.000000e+00 : f32
    %51 = vector.broadcast %cst_35 : f32 to vector<72x144xf32>
    %52 = arith.select %50, %32, %51 : vector<72x144xi1>, vector<72x144xf32>
    %cst_36 = arith.constant dense<0.000000e+00> : vector<72xf32>
    %53 = vector.multi_reduction <add>, %52, %cst_36 [1] : vector<72x144xf32> to vector<72xf32>
    %54 = vector.shape_cast %53 : vector<72xf32> to vector<72x1xf32>
    %55 = math.tanh %54 : vector<72x1xf32>
    %cst_37 = arith.constant 1.900000e+00 : f32
    %56 = vector.broadcast %cst_37 : f32 to vector<72x1xf32>
    %57 = arith.mulf %56, %55 : vector<72x1xf32>
    %c2_i32 = arith.constant 2 : i32
    %58 = vector.broadcast %c2_i32 : i32 to vector<72x1xi32>
    %59 = arith.addi %34, %58 : vector<72x1xi32>
    %60 = vector.broadcast %59 : vector<72x1xi32> to vector<72x144xi32>
    %61 = arith.cmpi eq, %33, %60 : vector<72x144xi32>
    %cst_38 = arith.constant 0.000000e+00 : f32
    %62 = vector.broadcast %cst_38 : f32 to vector<72x144xf32>
    %63 = arith.select %61, %32, %62 : vector<72x144xi1>, vector<72x144xf32>
    %cst_39 = arith.constant dense<0.000000e+00> : vector<72xf32>
    %64 = vector.multi_reduction <add>, %63, %cst_39 [1] : vector<72x144xf32> to vector<72xf32>
    %65 = vector.shape_cast %64 : vector<72xf32> to vector<72x1xf32>
    %66 = math.exp %57 : vector<72x1xf32>
    %67 = arith.mulf %46, %66 : vector<72x1xf32>
    %68 = arith.addf %67, %65 : vector<72x1xf32>
    %69 = arith.mulf %68, %68 : vector<72x1xf32>
    %70 = arith.addf %36, %69 : vector<72x1xf32>
    %71 = arith.addf %37, %41 : vector<72x1xf32>
    %72 = arith.addf %71, %57 : vector<72x1xf32>
    %73 = vector.extract_strided_slice %24 {offsets = [0, 1], sizes = [72, 1], strides = [1, 1]} : vector<72x4xf32> to vector<72x1xf32>
    %74 = math.tanh %73 : vector<72x1xf32>
    %cst_40 = arith.constant 1.900000e+00 : f32
    %75 = vector.broadcast %cst_40 : f32 to vector<72x1xf32>
    %76 = arith.mulf %75, %74 : vector<72x1xf32>
    %77 = vector.extract_strided_slice %24 {offsets = [0, 3], sizes = [72, 1], strides = [1, 1]} : vector<72x4xf32> to vector<72x1xf32>
    %78 = vector.extract_strided_slice %35 {offsets = [0, 1], sizes = [72, 1], strides = [1, 1]} : vector<72x2xf32> to vector<72x1xf32>
    %79 = math.exp %76 : vector<72x1xf32>
    %80 = arith.mulf %78, %79 : vector<72x1xf32>
    %81 = arith.addf %80, %77 : vector<72x1xf32>
    %c1_i32 = arith.constant 1 : i32
    %82 = vector.broadcast %c1_i32 : i32 to vector<72x1xi32>
    %83 = arith.addi %34, %82 : vector<72x1xi32>
    %84 = vector.broadcast %83 : vector<72x1xi32> to vector<72x144xi32>
    %85 = arith.cmpi eq, %33, %84 : vector<72x144xi32>
    %cst_41 = arith.constant 0.000000e+00 : f32
    %86 = vector.broadcast %cst_41 : f32 to vector<72x144xf32>
    %87 = arith.select %85, %32, %86 : vector<72x144xi1>, vector<72x144xf32>
    %cst_42 = arith.constant dense<0.000000e+00> : vector<72xf32>
    %88 = vector.multi_reduction <add>, %87, %cst_42 [1] : vector<72x144xf32> to vector<72xf32>
    %89 = vector.shape_cast %88 : vector<72xf32> to vector<72x1xf32>
    %90 = math.tanh %89 : vector<72x1xf32>
    %cst_43 = arith.constant 1.900000e+00 : f32
    %91 = vector.broadcast %cst_43 : f32 to vector<72x1xf32>
    %92 = arith.mulf %91, %90 : vector<72x1xf32>
    %c3_i32 = arith.constant 3 : i32
    %93 = vector.broadcast %c3_i32 : i32 to vector<72x1xi32>
    %94 = arith.addi %34, %93 : vector<72x1xi32>
    %95 = vector.broadcast %94 : vector<72x1xi32> to vector<72x144xi32>
    %96 = arith.cmpi eq, %33, %95 : vector<72x144xi32>
    %cst_44 = arith.constant 0.000000e+00 : f32
    %97 = vector.broadcast %cst_44 : f32 to vector<72x144xf32>
    %98 = arith.select %96, %32, %97 : vector<72x144xi1>, vector<72x144xf32>
    %cst_45 = arith.constant dense<0.000000e+00> : vector<72xf32>
    %99 = vector.multi_reduction <add>, %98, %cst_45 [1] : vector<72x144xf32> to vector<72xf32>
    %100 = vector.shape_cast %99 : vector<72xf32> to vector<72x1xf32>
    %101 = math.exp %92 : vector<72x1xf32>
    %102 = arith.mulf %81, %101 : vector<72x1xf32>
    %103 = arith.addf %102, %100 : vector<72x1xf32>
    %104 = arith.mulf %103, %103 : vector<72x1xf32>
    %105 = arith.addf %70, %104 : vector<72x1xf32>
    %106 = arith.addf %72, %76 : vector<72x1xf32>
    %107 = arith.addf %106, %92 : vector<72x1xf32>
    %c0_46 = arith.constant 0 : index
    %c0_47 = arith.constant 0 : index
    %108 = vector.load %arg2[%c0_46, %c0_47] : memref<2x72xf32, #tpu.memory_space<vmem>>, vector<2x72xf32>
    %cst_48 = arith.constant dense<0.000000e+00> : vector<2x1xf32>
    %109 = tpu.matmul %108, %105, %cst_48 {dimension_numbers = #tpu.dot_dimension_numbers<[1], [0], [0], [1], [0, 0, 1, 1], [], []>} : vector<2x72xf32>, vector<72x1xf32>, vector<2x1xf32> -> vector<2x1xf32>
    %c0_49 = arith.constant 0 : index
    %c0_50 = arith.constant 0 : index
    %110 = vector.load %arg2[%c0_49, %c0_50] : memref<2x72xf32, #tpu.memory_space<vmem>>, vector<2x72xf32>
    %cst_51 = arith.constant dense<0.000000e+00> : vector<2x1xf32>
    %111 = tpu.matmul %110, %107, %cst_51 {dimension_numbers = #tpu.dot_dimension_numbers<[1], [0], [0], [1], [0, 0, 1, 1], [], []>} : vector<2x72xf32>, vector<72x1xf32>, vector<2x1xf32> -> vector<2x1xf32>
    %112 = tpu.iota {dimensions = array<i32: 1>} : vector<2x128xi32>
    %c64_i32 = arith.constant 64 : i32
    %113 = vector.broadcast %c64_i32 : i32 to vector<2x128xi32>
    %114 = arith.cmpi slt, %112, %113 : vector<2x128xi32>
    %115 = vector.shape_cast %109 : vector<2x1xf32> to vector<2x1xf32>
    %116 = vector.broadcast %115 : vector<2x1xf32> to vector<2x128xf32>
    %117 = vector.shape_cast %111 : vector<2x1xf32> to vector<2x1xf32>
    %118 = vector.broadcast %117 : vector<2x1xf32> to vector<2x128xf32>
    %119 = arith.select %114, %116, %118 : vector<2x128xi1>, vector<2x128xf32>
    %c0_52 = arith.constant 0 : index
    %c0_53 = arith.constant 0 : index
    %120 = vector.load %arg13[%c0_52, %c0_53] : memref<2x128xf32, #tpu.memory_space<vmem>>, vector<2x128xf32>
    tpu.vector_store %arg13[%c0_52, %c0_53], %119 {strides = array<i32>} : memref<2x128xf32, #tpu.memory_space<vmem>>, vector<2x128xf32>,
    return
  }
}

</mosaic_0001>

<bundles_post_ra>
// kernel: wrapped_model_forward.1
= control target key start
LH: loop header
LB: loop body
LE: loop exit
PB: predicated region body
PF: predicated region fallthrough
CT: control target
= control target key end

     0   :  { %vm89_vm0 = vcmask 1043456   ;;  %vm90_vm1 = vcmask 1044480   ;;  %v1898_v0 = vmov 0.0   ;;  %v1899_v2 = vmov 65535   ;;  %s3010_s5 = inlined_call_operand.vmem [shape: bf16[9,8], index: 5, kind: input, shape index: {}]   ;;  %s3011_s0 = inlined_call_operand.vmem [shape: f32[72,9], index: 0, kind: input, shape index: {}]   ;;  %s3012_s6 = inlined_call_operand.vmem [shape: f32[1,8], index: 6, kind: input, shape index: {}]   ;;  %s3013_s2 = inlined_call_operand.vmem [shape: f32[2,72], index: 2, kind: input, shape index: {}]   ;;  %s3014_s7 = inlined_call_operand.vmem [shape: bf16[8,16], index: 7, kind: input, shape index: {}]   ;;  %s3015_s4 = inlined_call_operand.vmem [shape: s32[72,1], index: 4, kind: input, shape index: {}]   ;;  %s3016_s11 = inlined_call_operand.vmem [shape: bf16[16,144], index: 11, kind: input, shape index: {}]   ;;  %s3017_s9 = inlined_call_operand.vmem [shape: bf16[8,4], index: 9, kind: input, shape index: {}]   ;;  %s3018_s8 = inlined_call_operand.vmem [shape: f32[1,16], index: 8, kind: input, shape index: {}]   ;;  %s3019_s10 = inlined_call_operand.vmem [shape: f32[1,4], index: 10, kind: input, shape index: {}]   ;;  %s3020_s12 = inlined_call_operand.vmem [shape: f32[1,144], index: 12, kind: input, shape index: {}]   ;;  %s3021_s3 = inlined_call_operand.vmem [shape: f32[72,2], index: 3, kind: input, shape index: {}]   ;;  %s3022_s1 = inlined_call_operand.vmem [shape: f32[72,2], index: 1, kind: input, shape index: {}]   ;;  %s3023_s13 = inlined_call_operand.vmem [shape: f32[2,128], index: 13, kind: output, shape index: {}]  }
   0x1   :  { %1664 = vmatprep.subr.bf16.mxu0 %v1898_v0  ;;  %v1785_v1 = vld [vmem:[%s3010_s5] sm:$0x1f]   ;;  %1686 = vmatprep.subr.mxu1 %v1898_v0  ;;  %v91_v3 = vsel %vm89_vm0, 4294967295, %v1899_v2  ;;  %v46_v5 = vld [vmem:[%s3011_s0 + $0x8] sm:$0xff]  ;;  %vm1900_vm2 = vmmov 0   ;;  %vm73_vm3 = vcmask 72704  }
   0x2   :  { %v45_v4 = vld [vmem:[%s3011_s0] sm:$0xff]  ;;  %v92_v6 = vsel %vm90_vm1, %v91_v3, 0  ;;  %1666 = vmatprep.mubr.msk.bf16.mxu0 %vm1900_vm2, %v1898_v0  ;;  %1704 = vmatprep.mubr.msk.f32.mxu1 %vm1900_vm2, %v1898_v0  ;;  %v47_v9 = vld [vmem:[%s3011_s0 + $0x10] sm:$0xff]  ;;  %v48_v10 = vld [vmem:[%s3011_s0 + $0x18] sm:$0xff]  ;;  %vm3024_vm4 = vcmask 588800   ;;  %v1901_v3 = vmov 0  }
   0x3   :  { %v94_v7 = vand.u32 %v1785_v1, %v92_v6  ;;  %v54_v8 = vpack.c.bf16 %v46_v5, %v45_v4  ;;  %v55_v11 = vpack.c.bf16 %v48_v10, %v47_v9  ;;  %v49_v12 = vld [vmem:[%s3011_s0 + $0x20] sm:$0xff]  ;;  %v50_v13 = vld [vmem:[%s3011_s0 + $0x28] sm:$0xff]  ;;  %v51_v15 = vld [vmem:[%s3011_s0 + $0x30] sm:$0xff]  ;;  %1784 = vset.pattern.permute.xlu1 %v1901_v3  ;;  %1783 = vset.pattern.permute.xlu0 %v1901_v3  ;;  %vm262_vm5 = vcmask 64512  }
   0x4   :  { %v56_v14 = vpack.c.bf16 %v50_v13, %v49_v12  ;;  %v52_v16 = vld [vmem:[%s3011_s0 + $0x38] sm:$0xff]  ;;  %v53_v18 = vld [vmem:[%s3011_s0 + $0x40] sm:$0xff]  ;;  %v2061_v4 = vld [vmem:[%s3015_s4 + $0x30] sm:$0xff]  ;;  %vm437_vm6 = vcmask 130048   ;;  %vm519_vm7 = vcmask 1041408   ;;  %vm491_vm8 = vcmask 15360  }
   0x5   :  { %1665 = vmatpush3.bf16.msra.mxu0 %v94_v7  ;;  %v57_v17 = vpack.c.bf16 %v52_v16, %v51_v15  ;;  %v58_v19 = vpack.c.bf16 %v53_v18, %v53_v18  ;;  %v1588_v20 = vld [vmem:[%s3012_s6] ss:$0 sm:$0xff]  ;;  %v2066_v5 = vld [vmem:[%s3015_s4 + $0x28] sm:$0xff]  ;;  %v1059_v6 = vadd.s32 1, %v2061_v4  ;;  %v2075_v9 = vld [vmem:[%s3015_s4 + $0x38] sm:$0xff] }
   0x6   :  { %v177_v63 = vld [vmem:[%s3013_s2] sm:$0x3]  ;;  %v1058_v10 = vadd.s32 1, %v2066_v5  ;;  %v1060_v12 = vadd.s32 1, %v2075_v9 }
   0x7   :  { %v254_v1 = vld [vmem:[%s3014_s7] sm:$0xf]  ;;  %1081 = vperm.xlu1 %1784, %v1059_v6  }
   0x8   :  { %1667 = vmatmul.mubr.msk.bf16.vlgmr.msra.gmra.mxu0 %vm73_vm3, %v54_v8  ;;  %v267_v2 = vsel %vm89_vm0, %v254_v1, 0  ;;  %v656_v7 = vld [vmem:[%s3015_s4 + $0x40] sm:$0xff] }
   0x9   :  { %1670 = vmatprep.mubr.msk.bf16.mxu0 %vm1900_vm2, %v1898_v0  ;;  %v1061_v8 = vadd.s32 1, %v656_v7  ;;  %v1786_v13 = vld [vmem:[%s3016_s11] ss:$8 sps:$4 sm:$0xff]  }
   0xa   :  { %v2094_v16 = vld [vmem:[%s3015_s4 + $0x20] sm:$0xff] }
   0xb   :  { %1087 = vperm.xlu0 %1783, %v1061_v8   ;;  %1078 = vperm.xlu1 %1784, %v1058_v10   ;;  %v1057_v18 = vadd.s32 1, %v2094_v16 }
   0xf   :  { %1084 = vperm.xlu0 %1783, %v1060_v12  }
  0x10   :  { %1671 = vmatmul.mubr.msk.bf16.gmra.mxu0 %vm73_vm3, %v55_v11  ;;  %v2081_v11 = vld [vmem:[%s3015_s4 + $0x18] sm:$0xff] }
  0x11   :  { %1674 = vmatprep.mubr.msk.bf16.mxu0 %vm1900_vm2, %v1898_v0  ;;  %v1056_v15 = vadd.s32 1, %v2081_v11 }
  0x13   :  { %1072 = vperm.xlu1 %1784, %v1056_v15   ;;  %1075 = vperm.xlu0 %1783, %v1057_v18  }
  0x18   :  { %1675 = vmatmul.mubr.msk.bf16.gmra.mxu0 %vm73_vm3, %v56_v14  ;;  %v1788_v14 = vld [vmem:[%s3016_s11 + $0x4] ss:$8 sps:$4 sm:$0xff]  }
  0x19   :  { %1678 = vmatprep.mubr.msk.bf16.mxu0 %vm1900_vm2, %v1898_v0  ;;  %455 = vmatprep.subr.bf16.mxu0 %v1788_v14 }
  0x1a   :  { %456 = vmatpush1.bf16.msra.mxu0 %v1786_v13 }
  0x20   :  { %1679 = vmatmul.mubr.msk.bf16.gmra.mxu0 %vm73_vm3, %v57_v17  ;;  %v2099_v17 = vld [vmem:[%s3015_s4 + $0x8] sm:$0xff] }
  0x21   :  { %1682 = vmatprep.mubr.msk.bf16.mxu0 %vm1900_vm2, %v1898_v0 }
  0x28   :  { %1683 = vmatmul.mubr.msk.bf16.gmra.mxu0 %vm73_vm3, %v58_v19  ;;  %v1054_v19 = vadd.s32 1, %v2099_v17 }
  0x29   :  { %473 = vmatprep.mubr.bf16.mxu0 %v1901_v3 }
  0x2a   :  { %1066 = vperm.xlu1 %1784, %v1054_v19  }
  0xc8   :  { %v130_v21 = vpop.f32.mrf.mxu0 }
  0xc9   :  { %v131_v23 = vadd.f32 %v1588_v20, %v130_v21 }
  0xca   :  { %v1668_v22 = vpop.f32.mrf.mxu0 }
  0xcb   :  { %v168_v27 = vmax.f32 %v131_v23, 0.0  ;;  %v1187_v22 = vadd.s32 3, %v656_v7  ;;  %v2112_v23 = vld [vmem:[%s3015_s4] sm:$0xff] }
  0xcc   :  { %v133_v24 = vpop.f32.mrf.mxu0 }
  0xcd   :  { %v134_v25 = vadd.f32 %v1588_v20, %v133_v24  ;;  %v1053_v24 = vadd.s32 1, %v2112_v23  ;;  %1213 = vperm.xlu1 %1784, %v1187_v22  }
  0xce   :  { %v1669_v26 = vpop.f32.mrf.mxu0 }
  0xcf   :  { %v169_v28 = vmax.f32 %v134_v25, 0.0  ;;  %v1185_v25 = vadd.s32 3, %v2061_v4  ;;  %v1186_v26 = vadd.s32 3, %v2075_v9 }
  0xd0   :  { %v138_v29 = vpop.f32.mrf.mxu0 }
  0xd1   :  { %v2027_v30 = vpack.c.bf16 %v169_v28, %v168_v27  ;;  %v139_v32 = vadd.f32 %v1588_v20, %v138_v29  ;;  %1207 = vperm.xlu1 %1784, %v1185_v25  }
  0xd2   :  { %v1672_v31 = vpop.f32.mrf.mxu0 }
  0xd3   :  { %v170_v36 = vmax.f32 %v139_v32, 0.0  ;;  %v1182_v31 = vadd.s32 3, %v2081_v11  ;;  %v1179_v32 = vadd.s32 3, %v2112_v23 }
  0xd4   :  { %v141_v33 = vpop.f32.mrf.mxu0 }
  0xd5   :  { %v142_v34 = vadd.f32 %v1588_v20, %v141_v33  ;;  %v1180_v33 = vadd.s32 3, %v2099_v17 }
  0xd6   :  { %v1673_v35 = vpop.f32.mrf.mxu0 }
  0xd7   :  { %v171_v37 = vmax.f32 %v142_v34, 0.0  ;;  %v881_v34 = vadd.s32 2, %v656_v7 }
  0xd8   :  { %v146_v38 = vpop.f32.mrf.mxu0 }
  0xd9   :  { %v2029_v39 = vpack.c.bf16 %v171_v37, %v170_v36  ;;  %v147_v41 = vadd.f32 %v1588_v20, %v146_v38 }
  0xda   :  { %v1676_v40 = vpop.f32.mrf.mxu0 }
  0xdb   :  { %v172_v45 = vmax.f32 %v147_v41, 0.0 }
  0xdc   :  { %v149_v42 = vpop.f32.mrf.mxu0 }
  0xdd   :  { %v150_v43 = vadd.f32 %v1588_v20, %v149_v42  ;;  %v878_v42 = vadd.s32 2, %v2066_v5 }
  0xde   :  { %v1677_v44 = vpop.f32.mrf.mxu0 }
  0xdf   :  { %v173_v46 = vmax.f32 %v150_v43, 0.0  ;;  %v876_v43 = vadd.s32 2, %v2081_v11 }
  0xe0   :  { %v154_v47 = vpop.f32.mrf.mxu0 }
  0xe1   :  { %v2031_v48 = vpack.c.bf16 %v173_v46, %v172_v45  ;;  %v155_v50 = vadd.f32 %v1588_v20, %v154_v47  ;;  %v877_v47 = vadd.s32 2, %v2094_v16 }
  0xe2   :  { %v1680_v49 = vpop.f32.mrf.mxu0 }
  0xe3   :  { %v174_v54 = vmax.f32 %v155_v50, 0.0  ;;  %v1596_v49 = vld [vmem:[%s3018_s8] ss:$0 sm:$0xff]  ;;  %s1902_s8 = smov 126  }
  0xe4   :  { %v157_v51 = vpop.f32.mrf.mxu0 }
  0xe5   :  { %v158_v52 = vadd.f32 %v1588_v20, %v157_v51 }
  0xe6   :  { %v1681_v53 = vpop.f32.mrf.mxu0 }
  0xe7   :  { %v175_v55 = vmax.f32 %v158_v52, 0.0 }
  0xe8   :  { %v162_v56 = vpop.f32.mrf.mxu0 }
  0xe9   :  { %v2033_v57 = vpack.c.bf16 %v175_v55, %v174_v54  ;;  %v163_v58 = vadd.f32 %v1588_v20, %v162_v56  ;;  %v2106_v20 = vld [vmem:[%s3015_s4 + $0x10] sm:$0xff]  ;;  %v1598_v56 = vld [vmem:[%s3019_s10] ss:$0 sm:$0xff] }
  0xea   :  { %v1684_v59 = vpop.f32.mrf.mxu0  ;;  %v1055_v21 = vadd.s32 1, %v2106_v20  ;;  %v1181_v29 = vadd.s32 3, %v2106_v20  ;;  %v875_v44 = vadd.s32 2, %v2106_v20 }
  0xeb   :  { %v2035_v60 = vmax.f32 %v163_v58, 0.0 }
  0xec   :  { %v165_v61 = vpop.f32.mrf.mxu0  ;;  %1069 = vperm.xlu0 %1783, %v1055_v21  }
  0xed   :  { %1687 = vmatpush3.msra.mxu1 %v2035_v60 }
  0xee   :  { %v1685_v62 = vpop.f32.mrf.mxu0  ;;  %1688 = vmatprep.subr.mxu1 %v1898_v0 }
  0xef   :  { %1689 = vmatpush3.msra.mxu1 %v175_v55 }
  0xf0   :  { %1690 = vmatprep.subr.mxu1 %v1898_v0  ;;  %1063 = vperm.xlu0 %1783, %v1053_v24  }
  0xf1   :  { %1691 = vmatpush3.msra.mxu1 %v174_v54 }
  0xf2   :  { %1692 = vmatprep.subr.mxu1 %v1898_v0 }
  0xf3   :  { %1693 = vmatpush3.msra.mxu1 %v173_v46  ;;  %v873_v46 = vadd.s32 2, %v2112_v23 }
  0xf4   :  { %1694 = vmatprep.subr.mxu1 %v1898_v0  ;;  %1210 = vperm.xlu0 %1783, %v1186_v26  }
  0xf5   :  { %1695 = vmatpush3.msra.mxu1 %v172_v45  ;;  %v880_v45 = vadd.s32 2, %v2075_v9 }
  0xf6   :  { %1696 = vmatprep.subr.mxu1 %v1898_v0 }
  0xf7   :  { %1697 = vmatpush3.msra.mxu1 %v171_v37 }
  0xf8   :  { %1698 = vmatprep.subr.mxu1 %v1898_v0 }
  0xf9   :  { %1699 = vmatpush3.msra.mxu1 %v170_v36  ;;  %v314_v36 = vld [vmem:[%s3017_s9] sm:$0xf] }
  0xfa   :  { %1700 = vmatprep.subr.mxu1 %v1898_v0  ;;  %v338_v41 = vsel %vm89_vm0, %v314_v36, 0  ;;  %v482_v36 = vld [vmem:[%s3021_s3] sm:$0xff] }
  0xfb   :  { %1701 = vmatpush3.msra.mxu1 %v169_v28  ;;  %v1184_v28 = vadd.s32 3, %v2066_v5 }
  0xfc   :  { %1702 = vmatprep.subr.mxu1 %v1898_v0 }
  0xfd   :  { %1703 = vmatpush3.msra.mxu1 %v168_v27  ;;  %v1183_v27 = vadd.s32 3, %v2094_v16  ;;  %1204 = vperm.xlu0 %1783, %v1184_v28  }
  0xfe   :  { %1705 = vmatmul.mubr.msk.f32.vlgmr.msra.gmra.mxu1 %vm3024_vm4, %v177_v63  ;;  %1707 = vmatprep.subr.bf16.mxu1 %v1898_v0 }
  0xff   :  { %1709 = vmatprep.mubr.msk.bf16.mxu1 %vm1900_vm2, %v1898_v0  ;;  %1708 = vmatpush3.bf16.msra.mxu1 %v267_v2 }
 0x100   :  { %1713 = vmatprep.subr.bf16.mxu1 %v1898_v0  ;;  %1201 = vperm.xlu1 %1784, %v1183_v27   ;;  %v415_v27 = vld [vmem:[%s3020_s12] sm:$0x3] }
 0x101   :  { %1198 = vperm.xlu0 %1783, %v1182_v31  }
 0x104   :  { %1195 = vperm.xlu1 %1784, %v1181_v29  }
 0x105   :  { %1192 = vperm.xlu0 %1783, %v1180_v33  }
 0x108   :  { %1189 = vperm.xlu1 %1784, %v1179_v32  }
 0x109   :  { %781 = vperm.xlu0 %1783, %v656_v7  }
 0x10c   :  { %778 = vperm.xlu1 %1784, %v2075_v9  }
 0x10d   :  { %775 = vperm.xlu0 %1783, %v2061_v4  }
 0x110   :  { %772 = vperm.xlu1 %1784, %v2066_v5  }
 0x111   :  { %769 = vperm.xlu0 %1783, %v2094_v16  }
 0x114   :  { %766 = vperm.xlu1 %1784, %v2081_v11  }
 0x115   :  { %760 = vperm.xlu0 %1783, %v2099_v17  }
 0x118   :  { %763 = vperm.xlu1 %1784, %v2106_v20  }
 0x119   :  { %904 = vperm.xlu0 %1783, %v880_v45   ;;  %v2253_v45 = vpop.permute.xlu1 %1081 }
 0x11c   :  { %757 = vperm.xlu1 %1784, %v2112_v23   ;;  %v417_v23 = vlaneseq }
 0x11d   :  { %895 = vperm.xlu0 %1783, %v877_v47  }
 0x11e   :  { %v418_v24 = vshrl.u32 %v417_v23, 7 }
 0x120   :  { %907 = vperm.xlu1 %1784, %v881_v34   ;;  %v423_v25 = vsub.s32 1, %v418_v24  ;;  %v419_v26 = vsub.s32 0, %v418_v24  ;;  %v2312_v24 = vand.u32 127, %v417_v23 }
 0x122   :  { %v424_v28 = vrot.slane %v415_v27, %v423_v25  ;;  %v420_v29 = vrot.slane %v415_v27, %v419_v26  ;;  %v2315_v25 = vadd.s32 128, %v2312_v24 }
 0x1be   :  { %v248_v35 = vpop.f32.mrf.mxu1 }
 0x1bf   :  { %v252_v37 = vmul.f32 0.027777778, %v248_v35 }
 0x1c0   :  { %v1706_v38 = vpop.f32.mrf.mxu1 }
 0x1c1   :  { %v253_v40 = vpack.c.bf16 %v252_v37, %v252_v37  ;;  %v483_v38 = vld [vmem:[%s3021_s3 + $0x8] sm:$0xff] }
 0x1c3   :  { %1710 = vmatmul.mubr.msk.bf16.vlgmr.msra.gmra.mxu1 %vm262_vm5, %v253_v40  ;;  %v484_v40 = vld [vmem:[%s3021_s3 + $0x10] sm:$0xff] }
 0x1c4   :  { %1714 = vmatpush3.bf16.msra.mxu1 %v338_v41  ;;  %1715 = vmatprep.mubr.msk.bf16.mxu1 %vm1900_vm2, %v1898_v0  ;;  %v485_v41 = vld [vmem:[%s3021_s3 + $0x18] sm:$0xff] }
 0x1c5   :  { %1735 = vmatprep.subr.mxu1 %v1898_v0 }
 0x1cb   :  { %1716 = vmatmul.mubr.msk.bf16.vlgmr.msra.gmra.mxu1 %vm262_vm5, %v2027_v30  ;;  %v313_v30 = vpack.c.bf16 %v2035_v60, %v2035_v60 }
 0x1cc   :  { %1719 = vmatprep.mubr.msk.bf16.mxu1 %vm1900_vm2, %v1898_v0 }
 0x1d3   :  { %1720 = vmatmul.mubr.msk.bf16.gmra.mxu1 %vm262_vm5, %v2029_v39  ;;  %v879_v39 = vadd.s32 2, %v2061_v4 }
 0x1d4   :  { %1723 = vmatprep.mubr.msk.bf16.mxu1 %vm1900_vm2, %v1898_v0 }
 0x1d5   :  { %901 = vperm.xlu1 %1784, %v879_v39   ;;  %v487_v39 = vld [vmem:[%s3021_s3 + $0x28] sm:$0xff] }
 0x1d9   :  { %898 = vperm.xlu1 %1784, %v878_v42   ;;  %v488_v42 = vld [vmem:[%s3021_s3 + $0x30] sm:$0xff] }
 0x1db   :  { %1724 = vmatmul.mubr.msk.bf16.gmra.mxu1 %vm262_vm5, %v2031_v48  ;;  %v874_v48 = vadd.s32 2, %v2099_v17 }
 0x1dc   :  { %1727 = vmatprep.mubr.msk.bf16.mxu1 %vm1900_vm2, %v1898_v0 }
 0x1dd   :  { %892 = vperm.xlu1 %1784, %v876_v43   ;;  %886 = vperm.xlu0 %1783, %v874_v48   ;;  %v489_v43 = vld [vmem:[%s3021_s3 + $0x38] sm:$0xff] }
 0x1e1   :  { %889 = vperm.xlu1 %1784, %v875_v44   ;;  %v490_v44 = vld [vmem:[%s3021_s3 + $0x40] sm:$0xff] }
 0x1e3   :  { %1728 = vmatmul.mubr.msk.bf16.gmra.mxu1 %vm262_vm5, %v2033_v57 }
 0x1e4   :  { %1731 = vmatprep.mubr.msk.bf16.mxu1 %vm1900_vm2, %v1898_v0 }
 0x1e5   :  { %883 = vperm.xlu1 %1784, %v873_v46   ;;  %v2255_v46 = vpop.permute.xlu1 %1078 }
 0x1e9   :  { %v2257_v47 = vpop.permute.xlu1 %1072 }
 0x1eb   :  { %1732 = vmatmul.mubr.msk.bf16.gmra.mxu1 %vm262_vm5, %v313_v30  ;;  %v486_v30 = vld [vmem:[%s3021_s3 + $0x20] sm:$0xff]  ;;  %s1903_s3 = smov 127  }
 0x1ec   :  { %1753 = vmatprep.mubr.msk.f32.mxu1 %vm1900_vm2, %v1898_v0 }
 0x1ed   :  { %v2259_v48 = vpop.permute.xlu1 %1066 }
 0x1ee   :  { %vm1091_vm9 = vcmp.eq.s32.totalorder %v2312_v24, %v2259_v48 }
 0x283   :  { %v303_v50 = vpop.f32.mrf.mxu1 }
 0x284   :  { %v304_v51 = vadd.f32 %v1596_v49, %v303_v50  ;;  %v2261_v49 = vpop.permute.xlu1 %1213  ;;  %v2263_v50 = vpop.permute.xlu0 %1087 }
 0x285   :  { %v1711_v52 = vpop.f32.mrf.mxu1 }
 0x286   :  { %v412_v53 = vpack.c.bf16 %v304_v51, %v304_v51 }
 0x287   :  { %v306_v54 = vpop.f32.mrf.mxu1 }
 0x288   :  { %1606 = vmatmul.mubr.msk.bf16.vlgmr.msra.gmra.mxu0 %vm437_vm6, %v412_v53  ;;  %v2265_v51 = vpop.permute.xlu1 %1207  ;;  %v2267_v52 = vpop.permute.xlu0 %1084 }
 0x289   :  { %v1712_v55 = vpop.f32.mrf.mxu1  ;;  %590 = vmatprep.mubr.f32.mxu0 %v1898_v0 }
 0x28b   :  { %v374_v57 = vpop.f32.mrf.mxu1 }
 0x28c   :  { %v2176_v58 = vadd.f32 %v1598_v56, %v374_v57  ;;  %v2269_v53 = vpop.permute.xlu1 %1201  ;;  %v2271_v54 = vpop.permute.xlu0 %1075 }
 0x28d   :  { %v1717_v59 = vpop.f32.mrf.mxu1 }
 0x28f   :  { %v377_v60 = vpop.f32.mrf.mxu1 }
 0x290   :  { %v2178_v61 = vadd.f32 %v1598_v56, %v377_v60  ;;  %v2273_v55 = vpop.permute.xlu1 %1195 }
 0x291   :  { %v1718_v62 = vpop.f32.mrf.mxu1 }
 0x293   :  { %v382_v63 = vpop.f32.mrf.mxu1 }
 0x294   :  { %v2180_v1 = vadd.f32 %v1598_v56, %v382_v63  ;;  %v1190_v57 = vpop.permute.xlu1 %1189 }
 0x295   :  { %v1721_v2 = vpop.f32.mrf.mxu1  ;;  %vm1215_vm11 = vcmp.eq.s32.totalorder %v2312_v24, %v1190_v57  ;;  %vm1216_vm12 = vcmp.eq.s32.totalorder %v2315_v25, %v1190_v57 }
 0x297   :  { %v385_v3 = vpop.f32.mrf.mxu1 }
 0x298   :  { %v2182_v4 = vadd.f32 %v1598_v56, %v385_v3  ;;  %v2277_v60 = vpop.permute.xlu1 %778 }
 0x299   :  { %v1722_v5 = vpop.f32.mrf.mxu1 }
 0x29b   :  { %v390_v6 = vpop.f32.mrf.mxu1 }
 0x29c   :  { %v2184_v7 = vadd.f32 %v1598_v56, %v390_v6  ;;  %v2281_v63 = vpop.permute.xlu1 %772 }
 0x29d   :  { %v1725_v8 = vpop.f32.mrf.mxu1 }
 0x29f   :  { %v393_v9 = vpop.f32.mrf.mxu1 }
 0x2a0   :  { %v2186_v10 = vadd.f32 %v1598_v56, %v393_v9  ;;  %v2285_v3 = vpop.permute.xlu1 %766 }
 0x2a1   :  { %v1726_v11 = vpop.f32.mrf.mxu1 }
 0x2a2   :  { %730 = vrot.lane.b32.xlu1 %v2186_v10, %s1902_s8 }
 0x2a3   :  { %v398_v12 = vpop.f32.mrf.mxu1 }
 0x2a4   :  { %v2190_v13 = vadd.f32 %v1598_v56, %v398_v12  ;;  %v2289_v6 = vpop.permute.xlu1 %763 }
 0x2a5   :  { %v1729_v14 = vpop.f32.mrf.mxu1 }
 0x2a6   :  { %732 = vrot.lane.b32.xlu1 %v2190_v13, %s1902_s8 }
 0x2a7   :  { %v401_v15 = vpop.f32.mrf.mxu1 }
 0x2a8   :  { %v2194_v16 = vadd.f32 %v1598_v56, %v401_v15  ;;  %v758_v9 = vpop.permute.xlu1 %757 }
 0x2a9   :  { %v1730_v17 = vpop.f32.mrf.mxu1  ;;  %vm783_vm3 = vcmp.eq.s32.totalorder %v2312_v24, %v758_v9  ;;  %vm784_vm5 = vcmp.eq.s32.totalorder %v2315_v25, %v758_v9 }
 0x2aa   :  { %734 = vrot.lane.b32.xlu0 %v2194_v16, %s1902_s8 }
 0x2ab   :  { %v406_v18 = vpop.f32.mrf.mxu1 }
 0x2ac   :  { %v2198_v19 = vadd.f32 %v1598_v56, %v406_v18  ;;  %v2275_v56 = vpop.permute.xlu0 %1069  ;;  %v2295_v12 = vpop.permute.xlu1 %907 }
 0x2ad   :  { %v1733_v20 = vpop.f32.mrf.mxu1  ;;  %vm1094_vm1 = vcmp.eq.s32.totalorder %v2315_v25, %v2275_v56  ;;  %vm1093_vm4 = vcmp.eq.s32.totalorder %v2312_v24, %v2275_v56 }
 0x2ae   :  { %736 = vrot.lane.b32.xlu1 %v2198_v19, %s1902_s8  ;;  %1789 = vtanh.f32 %v2198_v19 }
 0x2af   :  { %v409_v21 = vpop.f32.mrf.mxu1  ;;  %1791 = vtanh.f32 %v2194_v16 }
 0x2b0   :  { %v1064_v59 = vpop.permute.xlu0 %1063  ;;  %v2299_v15 = vpop.permute.xlu1 %901  ;;  %1793 = vtanh.f32 %v2190_v13 }
 0x2b1   :  { %v1734_v22 = vpop.f32.mrf.mxu1  ;;  %vm1089_vm13 = vcmp.eq.s32.totalorder %v2312_v24, %v1064_v59  ;;  %vm1090_vm14 = vcmp.eq.s32.totalorder %v2315_v25, %v1064_v59  ;;  %1795 = vtanh.f32 %v2186_v10 }
 0x2b2   :  { %1797 = vtanh.f32 %v2184_v7 }
 0x2b3   :  { %1799 = vtanh.f32 %v2182_v4 }
 0x2b4   :  { %v2279_v62 = vpop.permute.xlu0 %1210  ;;  %v2303_v18 = vpop.permute.xlu1 %898 }
 0x2b8   :  { %v2283_v2 = vpop.permute.xlu0 %1204  ;;  %v2307_v21 = vpop.permute.xlu1 %892 }
 0x2bc   :  { %v2287_v5 = vpop.permute.xlu0 %1198  ;;  %v2317_v26 = vpop.permute.xlu1 %889 }
 0x2c0   :  { %v2291_v8 = vpop.permute.xlu0 %1192  ;;  %v884_v23 = vpop.permute.xlu1 %883 }
 0x2c1   :  { %vm1217_vm15 = vcmp.eq.s32.totalorder %v2312_v24, %v2291_v8 }
 0x2c4   :  { %v2293_v11 = vpop.permute.xlu0 %781 }
 0x2c8   :  { %v2297_v14 = vpop.permute.xlu0 %775 }
 0x2cc   :  { %v2301_v17 = vpop.permute.xlu0 %769 }
 0x2d0   :  { %v2305_v20 = vpop.permute.xlu0 %760 }
 0x2d4   :  { %v2309_v22 = vpop.permute.xlu0 %904 }
 0x2d8   :  { %v2319_v27 = vpop.permute.xlu0 %895 }
 0x314   :  { %v2717_v10 = vpop.permute.xlu1 %730 }
 0x348   :  { %v475_v31 = vpop.f32.mrf.mxu0 }
 0x349   :  { %v476_v34 = vadd.f32 %v475_v31, %v420_v29  ;;  %v887_v29 = vpop.permute.xlu0 %886 }
 0x34a   :  { %v477_v32 = vpop.f32.mrf.mxu0  ;;  %vm911_vm10 = vcmp.eq.s32.totalorder %v2312_v24, %v887_v29  ;;  %vm912_vm0 = vcmp.eq.s32.totalorder %v2315_v25, %v887_v29 }
 0x34b   :  { %v478_v33 = vadd.f32 %v477_v32, %v424_v28 }
 0x34c   :  { %v479_v35 = vpop.f32.mrf.mxu0 }
 0x34d   :  { %1607 = vmatprep.subr.msk.mxu0 %vm519_vm7, %v478_v33 }
 0x34e   :  { %v480_v37 = vpop.f32.mrf.mxu0  ;;  %1608 = vmatpush1.msk.msra.mxu0 %vm519_vm7, %v476_v34  ;;  %vm909_vm7 = vcmp.eq.s32.totalorder %v2312_v24, %v884_v23 }
 0x34f   :  { %1609 = vmatmul.mubr.msk.f32.vlgmr.msra.gmra.mxu0 %vm491_vm8, %v482_v36  ;;  %1756 = vmatprep.subr.mxu0 %v1898_v0 }
 0x350   :  { %596 = vmatprep.mubr.f32.mxu0 %v1898_v0 }
 0x353   :  { %1610 = vmatmul.mubr.msk.f32.gmra.mxu0 %vm491_vm8, %v483_v38 }
 0x354   :  { %602 = vmatprep.mubr.f32.mxu0 %v1898_v0 }
 0x357   :  { %1611 = vmatmul.mubr.msk.f32.gmra.mxu0 %vm491_vm8, %v484_v40 }
 0x358   :  { %608 = vmatprep.mubr.f32.mxu0 %v1898_v0 }
 0x35b   :  { %1612 = vmatmul.mubr.msk.f32.gmra.mxu0 %vm491_vm8, %v485_v41 }
 0x35c   :  { %614 = vmatprep.mubr.f32.mxu0 %v1898_v0 }
 0x35f   :  { %1613 = vmatmul.mubr.msk.f32.gmra.mxu0 %vm491_vm8, %v486_v30 }
 0x360   :  { %620 = vmatprep.mubr.f32.mxu0 %v1898_v0 }
 0x363   :  { %1614 = vmatmul.mubr.msk.f32.gmra.mxu0 %vm491_vm8, %v487_v39 }
 0x364   :  { %626 = vmatprep.mubr.f32.mxu0 %v1898_v0 }
 0x367   :  { %1615 = vmatmul.mubr.msk.f32.gmra.mxu0 %vm491_vm8, %v488_v42 }
 0x368   :  { %632 = vmatprep.mubr.f32.mxu0 %v1898_v0 }
 0x36b   :  { %1616 = vmatmul.mubr.msk.f32.gmra.mxu0 %vm491_vm8, %v489_v43 }
 0x36c   :  { %638 = vmatprep.mubr.f32.mxu0 %v1898_v0 }
 0x36f   :  { %1617 = vmatmul.mubr.msk.f32.gmra.mxu0 %vm491_vm8, %v490_v44  ;;  %vm910_vm8 = vcmp.eq.s32.totalorder %v2315_v25, %v884_v23 }
 0x370   :  { %1774 = vmatprep.mubr.msk.f32.mxu0 %vm1900_vm2, %v1898_v0  ;;  %vm787_vm2 = vcmp.eq.s32.totalorder %v2312_v24, %v2289_v6 }
 0x40f   :  { %v592_v28 = vpop.f32.mrf.mxu0 }
 0x410   :  { %v1107_v32 = vsel %vm1089_vm13, %v592_v28, 0.0  ;;  %v1233_v33 = vsel %vm1215_vm11, %v592_v28, 0.0  ;;  %vm1219_vm11 = vcmp.eq.s32.totalorder %v2312_v24, %v2273_v55  ;;  %v801_v44 = vsel %vm783_vm3, %v592_v28, 0.0 }
 0x411   :  { %v594_v31 = vpop.f32.mrf.mxu0  ;;  %v927_v57 = vsel %vm909_vm7, %v592_v28, 0.0  ;;  %vm790_vm13 = vcmp.eq.s32.totalorder %v2315_v25, %v2285_v3  ;;  %vm3025_vm7 = vcmp.eq.s32.totalorder %v2315_v25, %v2291_v8  ;;  %vm3030_vm3 = vcmp.eq.s32.totalorder %v2315_v25, %v2289_v6 }
 0x412   :  { %v1108_v34 = vsel %vm1090_vm14, %v594_v31, 0.0  ;;  %v1234_v35 = vsel %vm1216_vm12, %v594_v31, 0.0  ;;  %v802_v36 = vsel %vm784_vm5, %v594_v31, 0.0  ;;  %v928_v37 = vsel %vm910_vm8, %v594_v31, 0.0 }
 0x413   :  { %v598_v38 = vpop.f32.mrf.mxu0  ;;  %v1125_v40 = vsel %vm437_vm6, %v1108_v34, 0.0  ;;  %v1251_v41 = vsel %vm437_vm6, %v1234_v35, 0.0  ;;  %v819_v30 = vsel %vm437_vm6, %v802_v36, 0.0  ;;  %v945_v39 = vsel %vm437_vm6, %v928_v37, 0.0 }
 0x414   :  { %v1126_v42 = vadd.f32 %v1125_v40, %v1107_v32  ;;  %v2367_v43 = vadd.f32 %v1251_v41, %v1233_v33  ;;  %vm1096_vm12 = vcmp.eq.s32.totalorder %v2315_v25, %v2257_v47  ;;  %vm1222_vm14 = vcmp.eq.s32.totalorder %v2315_v25, %v2287_v5 }
 0x415   :  { %vm916_vm5 = vcmp.eq.s32.totalorder %v2315_v25, %v2307_v21  ;;  %v600_v59 = vpop.f32.mrf.mxu0  ;;  %v1235_v9 = vsel %vm1217_vm15, %v598_v38, 0.0  ;;  %v1109_v23 = vsel %vm1091_vm9, %v598_v38, 0.0  ;;  %v2387_v28 = vadd.f32 %v819_v30, %v801_v44 }
 0x416   :  { %v2389_v31 = vadd.f32 %v945_v39, %v927_v57  ;;  %1127 = vadd.xlane.f32.xlu0 %v1126_v42  ;;  %v1236_v32 = vsel %vm3025_vm7, %v600_v59, 0.0  ;;  %vm3026_vm8 = vcmp.eq.s32.totalorder %v2315_v25, %v2259_v48  ;;  %vm3027_vm15 = vcmp.eq.s32.totalorder %v2315_v25, %v2305_v20 }
 0x417   :  { %v1110_v33 = vsel %vm3026_vm8, %v600_v59, 0.0  ;;  %v804_v34 = vsel %vm3027_vm15, %v600_v59, 0.0  ;;  %v930_v35 = vsel %vm912_vm0, %v600_v59, 0.0  ;;  %v604_v36 = vpop.f32.mrf.mxu0  ;;  %v1255_v8 = vsel %vm437_vm6, %v1236_v32, 0.0 }
 0x418   :  { %v1129_v37 = vsel %vm437_vm6, %v1110_v33, 0.0  ;;  %v823_v48 = vsel %vm437_vm6, %v804_v34, 0.0  ;;  %v949_v40 = vsel %vm437_vm6, %v930_v35, 0.0  ;;  %v1256_v41 = vadd.f32 %v1255_v8, %v1235_v9 }
 0x419   :  { %v1130_v30 = vadd.f32 %v1129_v37, %v1109_v23  ;;  %vm3028_vm0 = vcmp.eq.s32.totalorder %v2312_v24, %v2305_v20  ;;  %v929_v42 = vsel %vm911_vm10, %v598_v38, 0.0  ;;  %vm1098_vm15 = vcmp.eq.s32.totalorder %v2315_v25, %v2271_v54  ;;  %v606_v20 = vpop.f32.mrf.mxu0 }
 0x41a   :  { %v803_v39 = vsel %vm3028_vm0, %v598_v38, 0.0  ;;  %vm913_vm7 = vcmp.eq.s32.totalorder %v2312_v24, %v2317_v26  ;;  %vm914_vm9 = vcmp.eq.s32.totalorder %v2315_v25, %v2317_v26  ;;  %v2431_v29 = vadd.f32 %v949_v40, %v929_v42  ;;  %1257 = vadd.xlane.f32.xlu1 %v1256_v41 }
 0x41b   :  { %v2429_v44 = vadd.f32 %v823_v48, %v803_v39  ;;  %1131 = vadd.xlane.f32.xlu0 %v1130_v30  ;;  %v1112_v38 = vsel %vm1094_vm1, %v606_v20, 0.0  ;;  %vm3029_vm0 = vcmp.eq.s32.totalorder %v2315_v25, %v2273_v55  ;;  %v806_v59 = vsel %vm3030_vm3, %v606_v20, 0.0  ;;  %v610_v23 = vpop.f32.mrf.mxu0 }
 0x41c   :  { %v1238_v57 = vsel %vm3029_vm0, %v606_v20, 0.0  ;;  %v932_v9 = vsel %vm914_vm9, %v606_v20, 0.0  ;;  %vm791_vm8 = vcmp.eq.s32.totalorder %v2312_v24, %v2301_v17  ;;  %vm917_vm10 = vcmp.eq.s32.totalorder %v2312_v24, %v2319_v27 }
 0x41d   :  { %v1111_v32 = vsel %vm1093_vm4, %v604_v36, 0.0  ;;  %v1133_v33 = vsel %vm437_vm6, %v1112_v38, 0.0  ;;  %v827_v34 = vsel %vm437_vm6, %v806_v59, 0.0  ;;  %v953_v35 = vsel %vm437_vm6, %v932_v9, 0.0  ;;  %v612_v48 = vpop.f32.mrf.mxu0 }
 0x41e   :  { %vm918_vm3 = vcmp.eq.s32.totalorder %v2315_v25, %v2319_v27  ;;  %v1134_v8 = vadd.f32 %v1133_v33, %v1111_v32  ;;  %v805_v37 = vsel %vm787_vm2, %v604_v36, 0.0  ;;  %v931_v56 = vsel %vm913_vm7, %v604_v36, 0.0 }
 0x41f   :  { %vm1100_vm4 = vcmp.eq.s32.totalorder %v2315_v25, %v2255_v46  ;;  %vm794_vm9 = vcmp.eq.s32.totalorder %v2315_v25, %v2281_v63  ;;  %vm1226_vm0 = vcmp.eq.s32.totalorder %v2315_v25, %v2283_v2  ;;  %vm920_vm1 = vcmp.eq.s32.totalorder %v2315_v25, %v2303_v18  ;;  %v616_v42 = vpop.f32.mrf.mxu0 }
 0x420   :  { %v1237_v6 = vsel %vm1219_vm11, %v604_v36, 0.0  ;;  %v1259_v26 = vsel %vm437_vm6, %v1238_v57, 0.0  ;;  %v2476_v40 = vadd.f32 %v827_v34, %v805_v37  ;;  %v2478_v41 = vadd.f32 %v953_v35, %v931_v56  ;;  %1135 = vadd.xlane.f32.xlu0 %v1134_v8 }
 0x421   :  { %vm1099_vm2 = vcmp.eq.s32.totalorder %v2312_v24, %v2255_v46  ;;  %v1240_v30 = vsel %vm1222_vm14, %v612_v48, 0.0  ;;  %v1114_v39 = vsel %vm1096_vm12, %v612_v48, 0.0  ;;  %v808_v55 = vsel %vm790_vm13, %v612_v48, 0.0  ;;  %v618_v34 = vpop.f32.mrf.mxu0 }
 0x422   :  { %v934_v36 = vsel %vm916_vm5, %v612_v48, 0.0  ;;  %vm3031_vm14 = vcmp.eq.s32.totalorder %v2312_v24, %v2287_v5  ;;  %v1263_v38 = vsel %vm437_vm6, %v1240_v30, 0.0  ;;  %v831_v57 = vsel %vm437_vm6, %v808_v55, 0.0 }
 0x423   :  { %v1239_v20 = vsel %vm3031_vm14, %v610_v23, 0.0  ;;  %v957_v59 = vsel %vm437_vm6, %v934_v36, 0.0  ;;  %v1260_v9 = vadd.f32 %v1259_v26, %v1237_v6  ;;  %vm3032_vm13 = vcmp.eq.s32.totalorder %v2312_v24, %v2285_v3  ;;  %v622_v48 = vpop.f32.mrf.mxu0 }
 0x424   :  { %v1264_v32 = vadd.f32 %v1263_v38, %v1239_v20  ;;  %v807_v33 = vsel %vm3032_vm13, %v610_v23, 0.0  ;;  %vm3033_vm5 = vcmp.eq.s32.totalorder %v2312_v24, %v2307_v21  ;;  %vm1102_vm14 = vcmp.eq.s32.totalorder %v2315_v25, %v2253_v45 }
 0x425   :  { %v933_v5 = vsel %vm3033_vm5, %v610_v23, 0.0  ;;  %vm1228_vm7 = vcmp.eq.s32.totalorder %v2315_v25, %v2265_v51  ;;  %vm3034_vm13 = vcmp.eq.s32.totalorder %v2312_v24, %v2257_v47  ;;  %v1137_v21 = vsel %vm437_vm6, %v1114_v39, 0.0  ;;  %1261 = vadd.xlane.f32.xlu0 %v1260_v9 }
 0x426   :  { %v1113_v3 = vsel %vm3034_vm13, %v610_v23, 0.0  ;;  %v2524_v35 = vadd.f32 %v831_v57, %v807_v33  ;;  %v2526_v8 = vadd.f32 %v957_v59, %v933_v5  ;;  %1265 = vadd.xlane.f32.xlu1 %v1264_v32  ;;  %v1116_v37 = vsel %vm1098_vm15, %v618_v34, 0.0 }
 0x427   :  { %vm3035_vm5 = vcmp.eq.s32.totalorder %v2315_v25, %v2269_v53  ;;  %vm1101_vm11 = vcmp.eq.s32.totalorder %v2312_v24, %v2253_v45  ;;  %vm3036_vm13 = vcmp.eq.s32.totalorder %v2315_v25, %v2301_v17  ;;  %v936_v23 = vsel %vm918_vm3, %v618_v34, 0.0 }
 0x428   :  { %v1242_v56 = vsel %vm3035_vm5, %v618_v34, 0.0  ;;  %v810_v47 = vsel %vm3036_vm13, %v618_v34, 0.0  ;;  %vm921_vm12 = vcmp.eq.s32.totalorder %v2312_v24, %v2299_v15  ;;  %vm795_vm15 = vcmp.eq.s32.totalorder %v2312_v24, %v2297_v14 }
 0x429   :  { %vm3037_vm5 = vcmp.eq.s32.totalorder %v2312_v24, %v2271_v54  ;;  %v1141_v26 = vsel %vm437_vm6, %v1116_v37, 0.0  ;;  %v835_v30 = vsel %vm437_vm6, %v810_v47, 0.0  ;;  %v961_v39 = vsel %vm437_vm6, %v936_v23, 0.0  ;;  %v624_v54 = vpop.f32.mrf.mxu0 }
 0x42a   :  { %v1115_v6 = vsel %vm3037_vm5, %v616_v42, 0.0  ;;  %v1138_v55 = vadd.f32 %v1137_v21, %v1113_v3  ;;  %v809_v20 = vsel %vm791_vm8, %v616_v42, 0.0  ;;  %v935_v38 = vsel %vm917_vm10, %v616_v42, 0.0 }
 0x42b   :  { %v1142_v36 = vadd.f32 %v1141_v26, %v1115_v6  ;;  %vm1104_vm3 = vcmp.eq.s32.totalorder %v2315_v25, %v2267_v52  ;;  %vm798_vm13 = vcmp.eq.s32.totalorder %v2315_v25, %v2277_v60  ;;  %vm3038_vm5 = vcmp.eq.s32.totalorder %v2312_v24, %v2269_v53  ;;  %v628_v33 = vpop.f32.mrf.mxu0 }
 0x42c   :  { %v1241_v57 = vsel %vm3038_vm5, %v616_v42, 0.0  ;;  %v1267_v59 = vsel %vm437_vm6, %v1242_v56, 0.0  ;;  %v2566_v9 = vadd.f32 %v835_v30, %v809_v20  ;;  %v2568_v17 = vadd.f32 %v961_v39, %v935_v38  ;;  %1139 = vadd.xlane.f32.xlu0 %v1138_v55 }
 0x42d   :  { %vm1227_vm8 = vcmp.eq.s32.totalorder %v2312_v24, %v2265_v51  ;;  %vm797_vm10 = vcmp.eq.s32.totalorder %v2312_v24, %v2277_v60  ;;  %1143 = vadd.xlane.f32.xlu1 %v1142_v36  ;;  %v1118_v27 = vsel %vm1100_vm4, %v624_v54, 0.0  ;;  %v1244_v53 = vsel %vm1226_vm0, %v624_v54, 0.0  ;;  %v630_v23 = vpop.f32.mrf.mxu0 }
 0x42e   :  { %v812_v42 = vsel %vm794_vm9, %v624_v54, 0.0  ;;  %v938_v32 = vsel %vm920_vm1, %v624_v54, 0.0  ;;  %v1117_v5 = vsel %vm1099_vm2, %v622_v48, 0.0  ;;  %v1145_v34 = vsel %vm437_vm6, %v1118_v27, 0.0 }
 0x42f   :  { %v839_v3 = vsel %vm437_vm6, %v812_v42, 0.0  ;;  %v965_v21 = vsel %vm437_vm6, %v938_v32, 0.0  ;;  %vm1231_vm4 = vcmp.eq.s32.totalorder %v2312_v24, %v2261_v49  ;;  %v1268_v37 = vadd.f32 %v1267_v59, %v1241_v57  ;;  %v634_v55 = vpop.f32.mrf.mxu0 }
 0x430   :  { %v1146_v56 = vadd.f32 %v1145_v34, %v1117_v5  ;;  %vm3039_vm9 = vcmp.eq.s32.totalorder %v2312_v24, %v2281_v63  ;;  %vm3040_vm1 = vcmp.eq.s32.totalorder %v2312_v24, %v2303_v18  ;;  %vm1232_vm0 = vcmp.eq.s32.totalorder %v2315_v25, %v2261_v49 }
 0x431   :  { %v811_v47 = vsel %vm3039_vm9, %v622_v48, 0.0  ;;  %v937_v46 = vsel %vm3040_vm1, %v622_v48, 0.0  ;;  %vm1106_vm2 = vcmp.eq.s32.totalorder %v2315_v25, %v2263_v50  ;;  %vm3041_vm5 = vcmp.eq.s32.totalorder %v2312_v24, %v2283_v2  ;;  %1269 = vadd.xlane.f32.xlu1 %v1268_v37  ;;  %v636_v45 = vpop.f32.mrf.mxu0 }
 0x432   :  { %v1243_v6 = vsel %vm3041_vm5, %v622_v48, 0.0  ;;  %v1271_v26 = vsel %vm437_vm6, %v1244_v53, 0.0  ;;  %v2608_v30 = vadd.f32 %v839_v3, %v811_v47  ;;  %v2610_v63 = vadd.f32 %v965_v21, %v937_v46  ;;  %1147 = vadd.xlane.f32.xlu0 %v1146_v56 }
 0x433   :  { %v1120_v18 = vsel %vm1102_vm14, %v630_v23, 0.0  ;;  %v1246_v39 = vsel %vm1228_vm7, %v630_v23, 0.0  ;;  %vm3042_vm9 = vcmp.eq.s32.totalorder %v2315_v25, %v2297_v14  ;;  %vm3043_vm1 = vcmp.eq.s32.totalorder %v2315_v25, %v2299_v15  ;;  %v2647_v3 = vpop.f32.mrf.mxu0 }
 0x434   :  { %v814_v2 = vsel %vm3042_vm9, %v630_v23, 0.0  ;;  %v940_v48 = vsel %vm3043_vm1, %v630_v23, 0.0  ;;  %v1119_v36 = vsel %vm1101_vm11, %v628_v33, 0.0  ;;  %v1149_v20 = vsel %vm437_vm6, %v1120_v18, 0.0 }
 0x435   :  { %v843_v38 = vsel %vm437_vm6, %v814_v2, 0.0  ;;  %v969_v54 = vsel %vm437_vm6, %v940_v48, 0.0  ;;  %v1272_v57 = vadd.f32 %v1271_v26, %v1243_v6  ;;  %v1150_v59 = vadd.f32 %v1149_v20, %v1119_v36  ;;  %v2659_v6 = vpop.f32.mrf.mxu0 }
 0x436   :  { %v813_v27 = vsel %vm795_vm15, %v628_v33, 0.0  ;;  %v939_v53 = vsel %vm921_vm12, %v628_v33, 0.0  ;;  %vm924_vm7 = vcmp.eq.s32.totalorder %v2315_v25, %v2309_v22  ;;  %v1275_v42 = vsel %vm437_vm6, %v1246_v39, 0.0 }
 0x437   :  { %v844_v32 = vadd.f32 %v843_v38, %v813_v27  ;;  %v970_v5 = vadd.f32 %v969_v54, %v939_v53  ;;  %vm923_vm11 = vcmp.eq.s32.totalorder %v2312_v24, %v2309_v22  ;;  %1273 = vadd.xlane.f32.xlu0 %v1272_v57  ;;  %1151 = vadd.xlane.f32.xlu1 %v1150_v59  ;;  %v1122_v14 = vsel %vm1104_vm3, %v636_v45, 0.0 }
 0x438   :  { %v816_v15 = vsel %vm798_vm13, %v636_v45, 0.0  ;;  %v942_v34 = vsel %vm924_vm7, %v636_v45, 0.0  ;;  %v1245_v21 = vsel %vm1227_vm8, %v628_v33, 0.0  ;;  %v815_v22 = vsel %vm797_vm10, %v634_v55, 0.0 }
 0x439   :  { %v847_v37 = vsel %vm437_vm6, %v816_v15, 0.0  ;;  %v973_v56 = vsel %vm437_vm6, %v942_v34, 0.0  ;;  %vm1230_vm12 = vcmp.eq.s32.totalorder %v2315_v25, %v2279_v62  ;;  %v1276_v47 = vadd.f32 %v1275_v42, %v1245_v21 }
 0x43a   :  { %v848_v46 = vadd.f32 %v847_v37, %v815_v22  ;;  %v941_v23 = vsel %vm923_vm11, %v634_v55, 0.0  ;;  %vm1103_vm14 = vcmp.eq.s32.totalorder %v2312_v24, %v2267_v52  ;;  %v1153_v51 = vsel %vm437_vm6, %v1122_v14, 0.0 }
 0x43b   :  { %v1249_v60 = vsel %vm1231_vm4, %v2647_v3, 0.0  ;;  %v974_v33 = vadd.f32 %v973_v56, %v941_v23  ;;  %1277 = vadd.xlane.f32.xlu1 %v1276_v47  ;;  %vm1105_vm15 = vcmp.eq.s32.totalorder %v2312_v24, %v2263_v50  ;;  %v1124_v26 = vsel %vm1106_vm2, %v2659_v6, 0.0 }
 0x43c   :  { %v1248_v18 = vsel %vm1230_vm12, %v636_v45, 0.0  ;;  %v1250_v52 = vsel %vm1232_vm0, %v2659_v6, 0.0  ;;  %v1121_v39 = vsel %vm1103_vm14, %v634_v55, 0.0  ;;  %v1123_v2 = vsel %vm1105_vm15, %v2647_v3, 0.0 }
 0x43d   :  { %v1157_v48 = vsel %vm437_vm6, %v1124_v26, 0.0  ;;  %v1283_v36 = vsel %vm437_vm6, %v1250_v52, 0.0  ;;  %v1154_v20 = vadd.f32 %v1153_v51, %v1121_v39  ;;  %v1279_v57 = vsel %vm437_vm6, %v1248_v18, 0.0 }
 0x43e   :  { %v1158_v38 = vadd.f32 %v1157_v48, %v1123_v2  ;;  %v1284_v54 = vadd.f32 %v1283_v36, %v1249_v60  ;;  %vm1229_vm3 = vcmp.eq.s32.totalorder %v2312_v24, %v2279_v62  ;;  %v1790_v62 = vpop.eup %1789  ;;  %vm800_vm13 = vcmp.eq.s32.totalorder %v2315_v25, %v2293_v11 }
 0x43f   :  { %1155 = vadd.xlane.f32.xlu1 %v1154_v20  ;;  %v1247_v50 = vsel %vm1229_vm3, %v634_v55, 0.0  ;;  %v1792_v19 = vpop.eup %1791  ;;  %v818_v16 = vsel %vm800_vm13, %v2659_v6, 0.0  ;;  %vm799_vm8 = vcmp.eq.s32.totalorder %v2312_v24, %v2293_v11  ;;  %vm926_vm10 = vcmp.eq.s32.totalorder %v2315_v25, %v2295_v12  ;;  %v661_v20 = vld [vmem:[%s3022_s1 + $0x20] sm:$0xff] }
 0x440   :  { %1159 = vadd.xlane.f32.xlu0 %v1158_v38  ;;  %v1280_v49 = vadd.f32 %v1279_v57, %v1247_v50  ;;  %v2720_v13 = vmul.f32 1.9, %v1792_v19  ;;  %v944_v11 = vsel %vm926_vm10, %v2659_v6, 0.0  ;;  %vm925_vm4 = vcmp.eq.s32.totalorder %v2312_v24, %v2295_v12  ;;  %v662_v50 = vld [vmem:[%s3022_s1 + $0x28] sm:$0xff] }
 0x441   :  { %v943_v55 = vsel %vm925_vm4, %v2647_v3, 0.0  ;;  %vm1571_vm2 = vcmp.lt.s32.totalorder %v2312_v24, 64 }
 0x442   :  { %v698_v2 = vmul.f32 1.442695, %v2720_v13 }
 0x443   :  { %1281 = vadd.xlane.f32.xlu1 %v1280_v49 }
 0x454   :  { %726 = vrot.lane.b32.xlu1 %v2182_v4, %s1902_s8 }
 0x456   :  { %728 = vrot.lane.b32.xlu0 %v2184_v7, %s1902_s8  ;;  %v851_v7 = vsel %vm437_vm6, %v818_v16, 0.0 }
 0x458   :  { %724 = vrot.lane.b32.xlu1 %v2180_v1, %s1902_s8 }
 0x45c   :  { %722 = vrot.lane.b32.xlu1 %v2178_v61, %s1902_s8 }
 0x460   :  { %720 = vrot.lane.b32.xlu1 %v2176_v58, %s1902_s8 }
 0x475   :  { %1253 = vadd.xlane.f32.xlu0 %v2367_v43  ;;  %v2709_v43 = vmul.f32 1.9, %v1790_v62 }
 0x479   :  { %845 = vadd.xlane.f32.xlu0 %v844_v32 }
 0x47d   :  { %841 = vadd.xlane.f32.xlu0 %v2608_v30 }
 0x481   :  { %837 = vadd.xlane.f32.xlu0 %v2566_v9 }
 0x484   :  { %849 = vadd.xlane.f32.xlu1 %v848_v46 }
 0x485   :  { %833 = vadd.xlane.f32.xlu0 %v2524_v35 }
 0x488   :  { %971 = vadd.xlane.f32.xlu1 %v970_v5 }
 0x489   :  { %829 = vadd.xlane.f32.xlu0 %v2476_v40  ;;  %v817_v40 = vsel %vm799_vm8, %v2647_v3, 0.0 }
 0x48c   :  { %963 = vadd.xlane.f32.xlu1 %v2568_v17  ;;  %v977_v17 = vsel %vm437_vm6, %v944_v11, 0.0  ;;  %vm3044_vm6 = vcmask 588800  }
 0x48d   :  { %825 = vadd.xlane.f32.xlu0 %v2429_v44  ;;  %v2725_v44 = vpop.permute.xlu0 %734  ;;  %v978_v59 = vadd.f32 %v977_v17, %v943_v55  ;;  %vm3045_vm0 = vmmov %vm3044_vm6 }
 0x490   :  { %955 = vadd.xlane.f32.xlu1 %v2478_v41  ;;  %v852_v41 = vadd.f32 %v851_v7, %v817_v40 }
 0x491   :  { %1285 = vadd.xlane.f32.xlu0 %v1284_v54 }
 0x495   :  { %821 = vadd.xlane.f32.xlu0 %v2387_v28  ;;  %v1794_v28 = vpop.eup %1793 }
 0x496   :  { %v2731_v35 = vmul.f32 1.9, %v1794_v28  ;;  %v1796_v4 = vpop.eup %1795 }
 0x497   :  { %v1798_v30 = vpop.eup %1797 }
 0x498   :  { %v2755_v27 = vmul.f32 1.9, %v1798_v30  ;;  %v1800_v53 = vpop.eup %1799  ;;  %v696_v23 = vmul.f32 1.442695, %v2731_v35 }
 0x499   :  { %975 = vadd.xlane.f32.xlu0 %v974_v33  ;;  %v2763_v12 = vmul.f32 1.9, %v1800_v53 }
 0x49a   :  { %v692_v21 = vmul.f32 1.442695, %v2755_v27 }
 0x49d   :  { %967 = vadd.xlane.f32.xlu0 %v2610_v63 }
 0x49f   :  { %v2737_v9 = vpop.xlane.xlu0 %1127 }
 0x4a1   :  { %959 = vadd.xlane.f32.xlu0 %v2526_v8  ;;  %1402 = vrot.lane.b32.xlu1 %v2709_v43, %s1903_s3  ;;  %v2735_v8 = vpop.permute.xlu1 %732 }
 0x4a4   :  { %v2749_v63 = vpop.xlane.xlu0 %1131 }
 0x4a5   :  { %951 = vadd.xlane.f32.xlu0 %v2431_v29  ;;  %1400 = vrot.lane.b32.xlu1 %v2720_v13, %s1903_s3  ;;  %v2742_v29 = vmul.f32 1.9, %v1796_v4  ;;  %v2747_v25 = vpop.permute.xlu1 %736 }
 0x4a7   :  { %v694_v22 = vmul.f32 1.442695, %v2742_v29 }
 0x4a9   :  { %853 = vadd.xlane.f32.xlu0 %v852_v41  ;;  %1398 = vrot.lane.b32.xlu1 %v2731_v35, %s1903_s3  ;;  %v2757_v45 = vpop.xlane.xlu1 %1257  ;;  %v2759_v42 = vpop.xlane.xlu0 %1135  ;;  %v663_v41 = vld [vmem:[%s3022_s1 + $0x30] sm:$0xff] }
 0x4ad   :  { %947 = vadd.xlane.f32.xlu0 %v2389_v31  ;;  %1396 = vrot.lane.b32.xlu1 %v2742_v29, %s1903_s3 }
 0x4ae   :  { %v2765_v31 = vpop.xlane.xlu0 %1261 }
 0x4af   :  { %v2767_v32 = vpop.xlane.xlu1 %1265 }
 0x4b1   :  { %979 = vadd.xlane.f32.xlu0 %v978_v59  ;;  %1394 = vrot.lane.b32.xlu1 %v2755_v27, %s1903_s3 }
 0x4b5   :  { %1392 = vrot.lane.b32.xlu1 %v2763_v12, %s1903_s3  ;;  %v2771_v5 = vpop.xlane.xlu0 %1139 }
 0x4b6   :  { %v1144_v14 = vpop.xlane.xlu1 %1143 }
 0x4b7   :  { %1801 = vtanh.f32 %v1144_v14 }
 0x4ba   :  { %v1270_v15 = vpop.xlane.xlu1 %1269 }
 0x4bb   :  { %v1148_v34 = vpop.xlane.xlu0 %1147 }
 0x4bc   :  { %1803 = vtanh.f32 %v1148_v34 }
 0x4c0   :  { %v1152_v3 = vpop.xlane.xlu1 %1151  ;;  %v1274_v33 = vpop.xlane.xlu0 %1273 }
 0x4c1   :  { %1805 = vtanh.f32 %v1152_v3 }
 0x4c2   :  { %1807 = vpow2.f32 %v692_v21 }
 0x4c3   :  { %1809 = vpow2.f32 %v694_v22 }
 0x4c4   :  { %v1278_v37 = vpop.xlane.xlu1 %1277  ;;  %v1802_v56 = vpop.eup %1801 }
 0x4c5   :  { %v2775_v47 = vmul.f32 1.9, %v1802_v56 }
 0x4c7   :  { %v1295_v51 = vmul.f32 1.442695, %v2775_v47 }
 0x4c8   :  { %v1156_v46 = vpop.xlane.xlu1 %1155 }
 0x4c9   :  { %1811 = vtanh.f32 %v1156_v46  ;;  %v1804_v6 = vpop.eup %1803  ;;  %v1160_v39 = vpop.xlane.xlu0 %1159 }
 0x4ca   :  { %v2779_v60 = vmul.f32 1.9, %v1804_v6  ;;  %1813 = vpow2.f32 %v1295_v51 }
 0x4cb   :  { %1815 = vpow2.f32 %v696_v23 }
 0x4cc   :  { %v1297_v26 = vmul.f32 1.442695, %v2779_v60  ;;  %v1282_v51 = vpop.xlane.xlu1 %1281 }
 0x4cd   :  { %v729_v54 = vpop.permute.xlu0 %728 }
 0x4ce   :  { %v1806_v18 = vpop.eup %1805  ;;  %1817 = vpow2.f32 %v1297_v26 }
 0x4cf   :  { %v2782_v52 = vmul.f32 1.9, %v1806_v18  ;;  %v1808_v36 = vpop.eup %1807 }
 0x4d0   :  { %v1810_v38 = vpop.eup %1809  ;;  %v706_v49 = vmul.f32 %v1808_v36, %v661_v20  ;;  %v690_v20 = vmul.f32 1.442695, %v2763_v12 }
 0x4d1   :  { %v1299_v48 = vmul.f32 1.442695, %v2782_v52  ;;  %v707_v7 = vmul.f32 %v1810_v38, %v662_v50 }
 0x4d2   :  { %v2794_v19 = vadd.f32 %v729_v54, %v706_v49 }
 0x4d3   :  { %1819 = vpow2.f32 %v1299_v48  ;;  %v2802_v11 = vadd.f32 %v2717_v10, %v707_v7  ;;  %v727_v48 = vpop.permute.xlu1 %726 }
 0x4d4   :  { %1821 = vpow2.f32 %v698_v2 }
 0x4d6   :  { %v1812_v57 = vpop.eup %1811 }
 0x4d7   :  { %v2792_v62 = vmul.f32 1.9, %v1812_v57  ;;  %v1814_v16 = vpop.eup %1813 }
 0x4d8   :  { %v1816_v40 = vpop.eup %1815  ;;  %v1309_v4 = vmul.f32 %v1814_v16, %v2794_v19  ;;  %v725_v16 = vpop.permute.xlu1 %724 }
 0x4d9   :  { %v1301_v28 = vmul.f32 1.442695, %v2792_v62  ;;  %v708_v55 = vmul.f32 %v1816_v40, %v663_v41 }
 0x4da   :  { %v1318_v30 = vadd.f32 %v1309_v4, %v1270_v15  ;;  %v664_v15 = vld [vmem:[%s3022_s1 + $0x38] sm:$0xff] }
 0x4db   :  { %1823 = vpow2.f32 %v1301_v28  ;;  %v1818_v17 = vpop.eup %1817  ;;  %v2806_v14 = vadd.f32 %v2735_v8, %v708_v55 }
 0x4dc   :  { %v1310_v59 = vmul.f32 %v1818_v17, %v2802_v11  ;;  %v1327_v53 = vmul.f32 %v1318_v30, %v1318_v30  ;;  %1825 = vtanh.f32 %v2180_v1  ;;  %v723_v17 = vpop.permute.xlu1 %722 }
 0x4dd   :  { %1827 = vtanh.f32 %v2178_v61 }
 0x4de   :  { %v1319_v34 = vadd.f32 %v1310_v59, %v1274_v33  ;;  %1349 = vrot.lane.b32.xlu0 %v1327_v53, %s1903_s3  ;;  %1829 = vtanh.f32 %v2176_v58 }
 0x4df   :  { %1831 = vtanh.f32 %v2771_v5 }
 0x4e0   :  { %v1820_v3 = vpop.eup %1819  ;;  %v1328_v21 = vmul.f32 %v1319_v34, %v1319_v34  ;;  %1833 = vtanh.f32 %v1160_v39 }
 0x4e1   :  { %v1311_v10 = vmul.f32 %v1820_v3, %v2806_v14  ;;  %v1822_v22 = vpop.eup %1821  ;;  %1835 = vtanh.f32 %v2759_v42  ;;  %v700_v42 = vmul.f32 1.442695, %v2709_v43 }
 0x4e2   :  { %1351 = vrot.lane.b32.xlu0 %v1328_v21, %s1903_s3  ;;  %v709_v8 = vmul.f32 %v1822_v22, %v664_v15  ;;  %1837 = vtanh.f32 %v2749_v63  ;;  %v721_v21 = vpop.permute.xlu1 %720 }
 0x4e3   :  { %v1320_v56 = vadd.f32 %v1311_v10, %v1278_v37  ;;  %1839 = vtanh.f32 %v2737_v9 }
 0x4e4   :  { %v2817_v23 = vadd.f32 %v2725_v44, %v709_v8  ;;  %1841 = vpow2.f32 %v690_v20  ;;  %v660_v8 = vld [vmem:[%s3022_s1 + $0x18] sm:$0xff] }
 0x4e5   :  { %v1329_v46 = vmul.f32 %v1320_v56, %v1320_v56  ;;  %1843 = vpow2.f32 %v700_v42  ;;  %v665_v56 = vld [vmem:[%s3022_s1 + $0x40] sm:$0xff] }
 0x4e7   :  { %1353 = vrot.lane.b32.xlu0 %v1329_v46, %s1903_s3 }
 0x4e8   :  { %v1824_v6 = vpop.eup %1823 }
 0x4e9   :  { %v1312_v1 = vmul.f32 %v1824_v6, %v2817_v23  ;;  %v1826_v37 = vpop.eup %1825 }
 0x4ea   :  { %v2824_v61 = vmul.f32 1.9, %v1826_v37  ;;  %v1828_v44 = vpop.eup %1827 }
 0x4eb   :  { %v1321_v33 = vadd.f32 %v1312_v1, %v1282_v51  ;;  %v2828_v18 = vmul.f32 1.9, %v1828_v44  ;;  %v1830_v58 = vpop.eup %1829  ;;  %v659_v1 = vld [vmem:[%s3022_s1 + $0x10] sm:$0xff] }
 0x4ec   :  { %v2833_v2 = vmul.f32 1.9, %v1830_v58  ;;  %v1832_v5 = vpop.eup %1831  ;;  %v688_v63 = vmul.f32 1.442695, %v2824_v61 }
 0x4ed   :  { %v1330_v26 = vmul.f32 %v1321_v33, %v1321_v33  ;;  %v1834_v39 = vpop.eup %1833  ;;  %v2841_v38 = vmul.f32 1.9, %v1832_v5  ;;  %v686_v41 = vmul.f32 1.442695, %v2828_v18 }
 0x4ee   :  { %v2845_v54 = vmul.f32 1.9, %v1834_v39  ;;  %v1836_v50 = vpop.eup %1835  ;;  %1845 = vpow2.f32 %v688_v63  ;;  %v684_v59 = vmul.f32 1.442695, %v2833_v2 }
 0x4ef   :  { %1355 = vrot.lane.b32.xlu1 %v1330_v26, %s1903_s3  ;;  %v1293_v49 = vmul.f32 1.442695, %v2841_v38  ;;  %v1838_v40 = vpop.eup %1837  ;;  %v2855_v9 = vmul.f32 1.9, %v1836_v50  ;;  %v658_v50 = vld [vmem:[%s3022_s1 + $0x8] sm:$0xff] }
 0x4f0   :  { %v1303_v7 = vmul.f32 1.442695, %v2845_v54  ;;  %v2857_v4 = vmul.f32 1.9, %v1838_v40  ;;  %v1840_v53 = vpop.eup %1839 }
 0x4f1   :  { %1847 = vpow2.f32 %v1293_v49  ;;  %v1291_v55 = vmul.f32 1.442695, %v2855_v9  ;;  %v1842_v10 = vpop.eup %1841  ;;  %v2866_v22 = vmul.f32 1.9, %v1840_v53 }
 0x4f2   :  { %1849 = vpow2.f32 %v1303_v7  ;;  %v1289_v34 = vmul.f32 1.442695, %v2857_v4  ;;  %v1844_v15 = vpop.eup %1843  ;;  %v705_v44 = vmul.f32 %v1842_v10, %v660_v8 }
 0x4f3   :  { %1390 = vrot.lane.b32.xlu1 %v2824_v61, %s1903_s3  ;;  %1851 = vpow2.f32 %v686_v41  ;;  %v710_v26 = vmul.f32 %v1844_v15, %v665_v56  ;;  %v1287_v37 = vmul.f32 1.442695, %v2866_v22  ;;  %v657_v15 = vld [vmem:[%s3022_s1] sm:$0xff] }
 0x4f4   :  { %1853 = vpow2.f32 %v1291_v55  ;;  %v2881_v20 = vadd.f32 %v727_v48, %v705_v44 }
 0x4f5   :  { %1855 = vpow2.f32 %v684_v59  ;;  %v2879_v39 = vadd.f32 %v2747_v25, %v710_v26 }
 0x4f6   :  { %1857 = vpow2.f32 %v1289_v34 }
 0x4f7   :  { %1388 = vrot.lane.b32.xlu1 %v2828_v18, %s1903_s3 }
 0x4fb   :  { %1386 = vrot.lane.b32.xlu1 %v2833_v2, %s1903_s3  ;;  %v1846_v6 = vpop.eup %1845 }
 0x4fc   :  { %v704_v42 = vmul.f32 %v1846_v6, %v659_v1 }
 0x4fe   :  { %v2838_v36 = vpop.xlane.xlu0 %1253  ;;  %v1848_v33 = vpop.eup %1847  ;;  %v749_v7 = vadd.f32 %v725_v16, %v704_v42 }
 0x4ff   :  { %v1850_v58 = vpop.eup %1849  ;;  %v1308_v49 = vmul.f32 %v1848_v33, %v2881_v20 }
 0x500   :  { %v1852_v63 = vpop.eup %1851  ;;  %v1313_v40 = vmul.f32 %v1850_v58, %v2879_v39 }
 0x501   :  { %v703_v25 = vmul.f32 %v1852_v63, %v658_v50  ;;  %v1854_v48 = vpop.eup %1853  ;;  %v1317_v8 = vadd.f32 %v1308_v49, %v2767_v32 }
 0x502   :  { %v2847_v57 = vpop.xlane.xlu0 %845  ;;  %v1856_v53 = vpop.eup %1855  ;;  %v1307_v34 = vmul.f32 %v1854_v48, %v749_v7 }
 0x503   :  { %v748_v10 = vadd.f32 %v723_v17, %v703_v25  ;;  %v1858_v16 = vpop.eup %1857  ;;  %v702_v1 = vmul.f32 %v1856_v53, %v657_v15  ;;  %v1326_v17 = vmul.f32 %v1317_v8, %v1317_v8 }
 0x504   :  { %v1316_v44 = vadd.f32 %v1307_v34, %v2765_v31 }
 0x505   :  { %v1306_v26 = vmul.f32 %v1858_v16, %v748_v10 }
 0x506   :  { %v2852_v28 = vpop.xlane.xlu0 %841  ;;  %v1325_v50 = vmul.f32 %v1316_v44, %v1316_v44 }
 0x507   :  { %v1315_v49 = vadd.f32 %v1306_v26, %v2757_v45 }
 0x509   :  { %v1324_v48 = vmul.f32 %v1315_v49, %v1315_v49 }
 0x50a   :  { %v2859_v30 = vpop.xlane.xlu0 %837 }
 0x50d   :  { %v850_v51 = vpop.xlane.xlu1 %849 }
 0x50e   :  { %v2864_v3 = vpop.xlane.xlu0 %833 }
 0x511   :  { %v2888_v41 = vpop.xlane.xlu1 %971 }
 0x512   :  { %v830_v46 = vpop.xlane.xlu0 %829 }
 0x513   :  { %1859 = vtanh.f32 %v830_v46 }
 0x515   :  { %v2897_v33 = vpop.xlane.xlu1 %963 }
 0x516   :  { %v826_v5 = vpop.xlane.xlu0 %825 }
 0x517   :  { %1861 = vtanh.f32 %v826_v5  ;;  %v2904_v5 = vadd.f32 %v721_v21, %v702_v1 }
 0x518   :  { %1863 = vpow2.f32 %v1287_v37 }
 0x51a   :  { %v1286_v55 = vpop.xlane.xlu0 %1285 }
 0x51b   :  { %v1322_v59 = vadd.f32 %v1313_v40, %v1286_v55  ;;  %v956_v55 = vpop.xlane.xlu1 %955 }
 0x51d   :  { %v1331_v56 = vmul.f32 %v1322_v59, %v1322_v59 }
 0x51e   :  { %v2894_v46 = vpop.xlane.xlu0 %821 }
 0x51f   :  { %1357 = vrot.lane.b32.xlu0 %v1331_v56, %s1903_s3  ;;  %v1403_v34 = vpop.permute.xlu1 %1402 }
 0x520   :  { %v1860_v6 = vpop.eup %1859 }
 0x521   :  { %v2899_v37 = vmul.f32 1.9, %v1860_v6 }
 0x522   :  { %v2902_v58 = vpop.xlane.xlu0 %975 }
 0x523   :  { %v985_v32 = vmul.f32 1.442695, %v2899_v37  ;;  %1347 = vrot.lane.b32.xlu0 %v1326_v17, %s1903_s3  ;;  %v1401_v8 = vpop.permute.xlu1 %1400 }
 0x524   :  { %v1862_v42 = vpop.eup %1861 }
 0x525   :  { %1865 = vpow2.f32 %v985_v32  ;;  %v2908_v63 = vmul.f32 1.9, %v1862_v42  ;;  %v1864_v40 = vpop.eup %1863 }
 0x526   :  { %v2911_v25 = vpop.xlane.xlu0 %967  ;;  %v1305_v31 = vmul.f32 %v1864_v40, %v2904_v5 }
 0x527   :  { %v983_v21 = vmul.f32 1.442695, %v2908_v63  ;;  %1345 = vrot.lane.b32.xlu0 %v1325_v50, %s1903_s3 }
 0x528   :  { %v1314_v59 = vadd.f32 %v1305_v31, %v2838_v36 }
 0x529   :  { %1867 = vpow2.f32 %v983_v21 }
 0x52a   :  { %v2917_v53 = vpop.xlane.xlu0 %959  ;;  %v1323_v45 = vmul.f32 %v1314_v59, %v1314_v59  ;;  %1869 = vtanh.f32 %v850_v51  ;;  %v1399_v51 = vpop.permute.xlu1 %1398 }
 0x52b   :  { %1343 = vrot.lane.b32.xlu0 %v1324_v48, %s1903_s3  ;;  %1871 = vtanh.f32 %v2847_v57 }
 0x52c   :  { %1873 = vtanh.f32 %v2852_v28 }
 0x52e   :  { %v952_v15 = vpop.xlane.xlu0 %951  ;;  %v1397_v32 = vpop.permute.xlu1 %1396 }
 0x52f   :  { %1341 = vrot.lane.b32.xlu0 %v1323_v45, %s1903_s3 }
 0x532   :  { %v1866_v56 = vpop.eup %1865  ;;  %v854_v16 = vpop.xlane.xlu0 %853 }
 0x533   :  { %v1001_v36 = vmul.f32 %v1866_v56, %v749_v7  ;;  %1875 = vtanh.f32 %v854_v16  ;;  %v1395_v31 = vpop.permute.xlu1 %1394 }
 0x534   :  { %1877 = vtanh.f32 %v2859_v30 }
 0x535   :  { %v2924_v6 = vadd.f32 %v1001_v36, %v956_v55  ;;  %1879 = vtanh.f32 %v2864_v3 }
 0x536   :  { %v1868_v1 = vpop.eup %1867  ;;  %1881 = vtanh.f32 %v2894_v46 }
 0x537   :  { %v1000_v26 = vmul.f32 %v1868_v1, %v748_v10  ;;  %v1870_v44 = vpop.eup %1869 }
 0x538   :  { %v1872_v57 = vpop.eup %1871  ;;  %v2929_v28 = vmul.f32 1.9, %v1870_v44 }
 0x539   :  { %v2927_v17 = vadd.f32 %v1000_v26, %v952_v15  ;;  %v1874_v42 = vpop.eup %1873  ;;  %v2931_v7 = vmul.f32 1.9, %v1872_v57  ;;  %v1393_v26 = vpop.permute.xlu1 %1392 }
 0x53a   :  { %v2933_v40 = vmul.f32 1.9, %v1874_v42  ;;  %v1051_v3 = vadd.f32 %v2929_v28, %v2720_v13 }
 0x53b   :  { %v1050_v48 = vadd.f32 %v2931_v7, %v2731_v35 }
 0x53c   :  { %v1420_v59 = vadd.f32 %v1401_v8, %v1051_v3  ;;  %v1049_v16 = vadd.f32 %v2933_v40, %v2742_v29  ;;  %v991_v3 = vmul.f32 1.442695, %v2933_v40 }
 0x53d   :  { %v1419_v56 = vadd.f32 %v1399_v51, %v1050_v48 }
 0x53e   :  { %v1429_v1 = vadd.f32 %v1420_v59, %v2792_v62  ;;  %v1418_v13 = vadd.f32 %v1397_v32, %v1049_v16 }
 0x53f   :  { %v1428_v8 = vadd.f32 %v1419_v56, %v2782_v52 }
 0x540   :  { %v1876_v50 = vpop.eup %1875  ;;  %v1427_v29 = vadd.f32 %v1418_v13, %v2779_v60  ;;  %v1046_v60 = vadd.f32 %v2899_v37, %v2824_v61 }
 0x541   :  { %v872_v49 = vmul.f32 1.9, %v1876_v50  ;;  %v1878_v30 = vpop.eup %1877 }
 0x542   :  { %v1880_v55 = vpop.eup %1879  ;;  %v868_v21 = vmul.f32 1.9, %v1878_v30 }
 0x543   :  { %v1052_v10 = vadd.f32 %v872_v49, %v2709_v43  ;;  %v867_v15 = vmul.f32 1.9, %v1880_v55  ;;  %v1882_v52 = vpop.eup %1881 }
 0x544   :  { %v1048_v43 = vadd.f32 %v868_v21, %v2755_v27  ;;  %v864_v44 = vmul.f32 1.9, %v1882_v52 }
 0x545   :  { %v1421_v45 = vadd.f32 %v1403_v34, %v1052_v10  ;;  %v1047_v34 = vadd.f32 %v867_v15, %v2763_v12  ;;  %v987_v10 = vmul.f32 1.442695, %v867_v15 }
 0x546   :  { %v1417_v35 = vadd.f32 %v1395_v31, %v1048_v43  ;;  %v1044_v50 = vadd.f32 %v864_v44, %v2833_v2  ;;  %v948_v2 = vpop.xlane.xlu0 %947  ;;  %v981_v31 = vmul.f32 1.442695, %v864_v44 }
 0x547   :  { %v1430_v36 = vadd.f32 %v1421_v45, %v2845_v54  ;;  %v1416_v54 = vadd.f32 %v1393_v26, %v1047_v34 }
 0x548   :  { %v1426_v27 = vadd.f32 %v1417_v35, %v2775_v47 }
 0x549   :  { %1757 = vmatpush3.msra.mxu0 %v1430_v36  ;;  %v1425_v62 = vadd.f32 %v1416_v54, %v2841_v38  ;;  %v1045_v38 = vadd.f32 %v2908_v63, %v2828_v18  ;;  %v2972_v18 = vld [vmem:[%s3013_s2] sm:$0x3]  ;;  %v993_v63 = vmul.f32 1.442695, %v2931_v7 }
 0x54a   :  { %1758 = vmatprep.subr.mxu0 %v1898_v0 }
 0x54b   :  { %1759 = vmatpush3.msra.mxu0 %v1429_v1 }
 0x54c   :  { %1760 = vmatprep.subr.mxu0 %v1898_v0 }
 0x54d   :  { %1761 = vmatpush3.msra.mxu0 %v1428_v8 }
 0x54e   :  { %1762 = vmatprep.subr.mxu0 %v1898_v0 }
 0x54f   :  { %1763 = vmatpush3.msra.mxu0 %v1427_v29 }
 0x550   :  { %1764 = vmatprep.subr.mxu0 %v1898_v0 }
 0x551   :  { %1765 = vmatpush3.msra.mxu0 %v1426_v27 }
 0x552   :  { %1766 = vmatprep.subr.mxu0 %v1898_v0 }
 0x553   :  { %1767 = vmatpush3.msra.mxu0 %v1425_v62 }
 0x554   :  { %1768 = vmatprep.subr.mxu0 %v1898_v0 }
 0x561   :  { %v2957_v12 = vpop.permute.xlu1 %1355 }
 0x565   :  { %v1391_v47 = vpop.permute.xlu1 %1390 }
 0x566   :  { %v1415_v51 = vadd.f32 %v1391_v47, %v1046_v60 }
 0x568   :  { %v1424_v57 = vadd.f32 %v1415_v51, %v2855_v9  ;;  %v997_v9 = vmul.f32 1.442695, %v872_v49  ;;  %v980_v49 = vpop.xlane.xlu0 %979 }
 0x569   :  { %v1389_v32 = vpop.permute.xlu1 %1388 }
 0x56a   :  { %v1414_v42 = vadd.f32 %v1389_v32, %v1045_v38  ;;  %1769 = vmatpush3.msra.mxu0 %v1424_v57  ;;  %1883 = vpow2.f32 %v997_v9 }
 0x56b   :  { %1770 = vmatprep.subr.mxu0 %v1898_v0 }
 0x56c   :  { %v1423_v46 = vadd.f32 %v1414_v42, %v2857_v4  ;;  %v995_v4 = vmul.f32 1.442695, %v2929_v28  ;;  %v1350_v55 = vpop.permute.xlu0 %1349 }
 0x56d   :  { %v1387_v30 = vpop.permute.xlu1 %1386 }
 0x56e   :  { %v1413_v61 = vadd.f32 %v1387_v30, %v1044_v50  ;;  %1771 = vmatpush3.msra.mxu0 %v1423_v46  ;;  %1885 = vpow2.f32 %v995_v4 }
 0x56f   :  { %1772 = vmatprep.subr.mxu0 %v1898_v0  ;;  %1887 = vpow2.f32 %v993_v63 }
 0x570   :  { %v1422_v37 = vadd.f32 %v1413_v61, %v2866_v22  ;;  %v989_v22 = vmul.f32 1.442695, %v868_v21  ;;  %1889 = vpow2.f32 %v991_v3  ;;  %v1352_v45 = vpop.permute.xlu0 %1351 }
 0x572   :  { %1773 = vmatpush3.msra.mxu0 %v1422_v37  ;;  %1891 = vpow2.f32 %v989_v22 }
 0x573   :  { %1775 = vmatmul.mubr.msk.f32.vlgmr.msra.gmra.mxu0 %vm3044_vm6, %v2972_v18  ;;  %1893 = vpow2.f32 %v987_v10 }
 0x574   :  { %1895 = vpow2.f32 %v981_v31  ;;  %v1354_v1 = vpop.permute.xlu0 %1353 }
 0x577   :  { %v1884_v59 = vpop.eup %1883 }
 0x578   :  { %v1007_v28 = vmul.f32 %v1884_v59, %v2879_v39 }
 0x57a   :  { %v1016_v21 = vadd.f32 %v1007_v28, %v980_v49 }
 0x57b   :  { %v1886_v48 = vpop.eup %1885 }
 0x57c   :  { %v1888_v7 = vpop.eup %1887  ;;  %v1006_v56 = vmul.f32 %v1886_v48, %v2817_v23  ;;  %v1025_v35 = vmul.f32 %v1016_v21, %v1016_v21 }
 0x57d   :  { %v1890_v40 = vpop.eup %1889  ;;  %v1005_v16 = vmul.f32 %v1888_v7, %v2806_v14 }
 0x57e   :  { %v1015_v15 = vadd.f32 %v1006_v56, %v2902_v58  ;;  %v1004_v13 = vmul.f32 %v1890_v40, %v2802_v11 }
 0x57f   :  { %v1892_v36 = vpop.eup %1891  ;;  %v1014_v26 = vadd.f32 %v1005_v16, %v2888_v41 }
 0x580   :  { %v1894_v43 = vpop.eup %1893  ;;  %v1003_v8 = vmul.f32 %v1892_v36, %v2794_v19  ;;  %v1024_v34 = vmul.f32 %v1015_v15, %v1015_v15  ;;  %v1013_v23 = vadd.f32 %v1004_v13, %v2911_v25 }
 0x581   :  { %v1002_v29 = vmul.f32 %v1894_v43, %v2881_v20  ;;  %v1023_v54 = vmul.f32 %v1014_v26, %v1014_v26  ;;  %v1896_v11 = vpop.eup %1895 }
 0x582   :  { %v1012_v27 = vadd.f32 %v1003_v8, %v2897_v33  ;;  %v1375_v58 = vadd.f32 %v2957_v12, %v1024_v34  ;;  %v1022_v62 = vmul.f32 %v1013_v23, %v1013_v23  ;;  %v999_v20 = vmul.f32 %v1896_v11, %v2904_v5 }
 0x583   :  { %v1011_v19 = vadd.f32 %v1002_v29, %v2917_v53  ;;  %v1374_v60 = vadd.f32 %v1354_v1, %v1023_v54  ;;  %v1019_v53 = vmul.f32 %v2924_v6, %v2924_v6  ;;  %v1018_v5 = vmul.f32 %v2927_v17, %v2927_v17 }
 0x584   :  { %v1021_v25 = vmul.f32 %v1012_v27, %v1012_v27  ;;  %v1373_v52 = vadd.f32 %v1352_v45, %v1022_v62  ;;  %v1008_v51 = vadd.f32 %v999_v20, %v948_v2 }
 0x585   :  { %v1020_v12 = vmul.f32 %v1011_v19, %v1011_v19 }
 0x586   :  { %v1372_v47 = vadd.f32 %v1350_v55, %v1021_v25  ;;  %v1017_v32 = vmul.f32 %v1008_v51, %v1008_v51 }
 0x591   :  { %v1358_v39 = vpop.permute.xlu0 %1357 }
 0x592   :  { %v1376_v14 = vadd.f32 %v1358_v39, %v1025_v35 }
 0x594   :  { %1736 = vmatpush3.msra.mxu1 %v1376_v14 }
 0x595   :  { %1737 = vmatprep.subr.mxu1 %v1898_v0  ;;  %v1348_v41 = vpop.permute.xlu0 %1347 }
 0x596   :  { %1738 = vmatpush3.msra.mxu1 %v1375_v58  ;;  %v1371_v44 = vadd.f32 %v1348_v41, %v1020_v12 }
 0x597   :  { %1739 = vmatprep.subr.mxu1 %v1898_v0 }
 0x598   :  { %1740 = vmatpush3.msra.mxu1 %v1374_v60 }
 0x599   :  { %1741 = vmatprep.subr.mxu1 %v1898_v0  ;;  %v1346_v33 = vpop.permute.xlu0 %1345 }
 0x59a   :  { %1742 = vmatpush3.msra.mxu1 %v1373_v52  ;;  %v1370_v38 = vadd.f32 %v1346_v33, %v1019_v53 }
 0x59b   :  { %1743 = vmatprep.subr.mxu1 %v1898_v0 }
 0x59c   :  { %1744 = vmatpush3.msra.mxu1 %v1372_v47 }
 0x59d   :  { %1745 = vmatprep.subr.mxu1 %v1898_v0  ;;  %v1344_v57 = vpop.permute.xlu0 %1343 }
 0x59e   :  { %1746 = vmatpush3.msra.mxu1 %v1371_v44  ;;  %v1369_v42 = vadd.f32 %v1344_v57, %v1018_v5 }
 0x59f   :  { %1747 = vmatprep.subr.mxu1 %v1898_v0 }
 0x5a0   :  { %1748 = vmatpush3.msra.mxu1 %v1370_v38 }
 0x5a1   :  { %1749 = vmatprep.subr.mxu1 %v1898_v0  ;;  %v1342_v46 = vpop.permute.xlu0 %1341 }
 0x5a2   :  { %v1368_v6 = vadd.f32 %v1342_v46, %v1017_v32  ;;  %1750 = vmatpush3.msra.mxu1 %v1369_v42 }
 0x5a3   :  { %1751 = vmatprep.subr.mxu1 %v1898_v0 }
 0x5a4   :  { %1752 = vmatpush3.msra.mxu1 %v1368_v6 }
 0x5a5   :  { %1754 = vmatmul.mubr.msk.f32.vlgmr.msra.gmra.mxu1 %vm3045_vm0, %v2972_v18 }
 0x633   :  { %v1567_v50 = vpop.f32.mrf.mxu0 }
 0x634   :  { %1579 = vperm.xlu0 %1783, %v1567_v50  }
 0x635   :  { %v1776_v17 = vpop.f32.mrf.mxu0 }
 0x665   :  { %v1497_v30 = vpop.f32.mrf.mxu1 }
 0x666   :  { %1574 = vperm.xlu1 %1784, %v1497_v30  }
 0x667   :  { %v1755_v61 = vpop.f32.mrf.mxu1 }
 0x6af   :  { %v1580_v37 = vpop.permute.xlu0 %1579 }
 0x6e1   :  { %v1575_v9 = vpop.permute.xlu1 %1574 }
 0x6e2   :  { %v1582_v4 = vsel %vm1571_vm2, %v1575_v9, %v1580_v37 }
 0x6e3   :  { %1583 = vst [vmem:[%s3023_s13] sm:$0x3] %v1582_v4 }

</bundles_post_ra>
